<compile_context>
chip_gen: v6e
topology: v6e:2x2x1
jax: 0.10.0
libtpu: 0.0.40
codegen_flags: <defaults>
</compile_context>

<pallas_src>
import jax
import jax.numpy as jnp
from jax.experimental import pallas as pl
from jax.experimental.pallas import tpu as pltpu


def _round_up8(x: int) -> int:
    return ((x + 7) // 8) * 8


def _gru2_kernel(x_ref, p_ref, out_ref, hid_ref):
    """x_ref: (Lx, N, Ffp) time-major input; p_ref: packed params slab.

    Packed slab layout (rows x 3H lanes):
      [0          : Ffp        )  w1x  (input->gates, layer 1; rows Ff..Ffp are zero)
      [Ffp        : Ffp+H      )  w1h  (hidden->gates, layer 1)
      [Ffp+H      : Ffp+2H     )  w2x  (input->gates, layer 2)
      [Ffp+2H     : Ffp+3H     )  w2h  (hidden->gates, layer 2)
      [Ffp+3H     : Ffp+3H+4   )  bias rows: b1, b1hn(pad), b2, b2hn(pad)
      remaining rows              zero padding to a multiple of 8
    """
    lx, n, ffp = x_ref.shape
    hid = hid_ref.shape[-1]
    h3 = 3 * hid

    # ---------- static, 8-aligned slices of the single packed parameter slab ----
    o_w1h = ffp
    o_w2x = ffp + hid
    o_w2h = ffp + 2 * hid
    o_b = ffp + 3 * hid

    w1x = p_ref[0:ffp, :]
    w1h = p_ref[o_w1h:o_w2x, :]
    w2x = p_ref[o_w2x:o_w2h, :]
    w2h = p_ref[o_w2h:o_b, :]
    b_all = p_ref[o_b:o_b + 4, :]                              # (4, 3H)

    # Loop-invariant bias broadcasts hoisted out of the recurrence
    # (JAX does not CSE broadcast_in_dim).
    b1 = b_all[0:1, :]                                         # (1, 3H) used once below
    b1hn = jnp.broadcast_to(b_all[1:2, 0:hid], (n, hid))
    b2 = jnp.broadcast_to(b_all[2:3, :], (n, h3))
    b2hn = jnp.broadcast_to(b_all[3:4, 0:hid], (n, hid))

    # ---------- hoisted, non-recurrent work: layer-1 input projection -----------
    # Time-major ordering so gx1_all[t] is a contiguous slab in the loop.
    x2d = x_ref[...].reshape(lx * n, ffp)                      # (Lx*N, Ffp)
    gx1_all = (jnp.dot(x2d, w1x, preferred_element_type=jnp.float32)
               + b1).reshape(lx, n, h3)                        # (Lx, N, 3H)

    # ht = zeros(num_layers, N, HID) in the PyTorch module.
    h1 = jnp.zeros((n, hid), jnp.float32)
    h2 = jnp.zeros((n, hid), jnp.float32)

    # ---------- recurrence: fully unrolled (Lx is small and static) -------------
    outs = []
    for t in range(lx):
        # Layer 1: only the recurrent matmul sits on the serial chain.
        gx1 = gx1_all[t]                                       # (N, 3H), contiguous
        gh1 = jnp.dot(h1, w1h, preferred_element_type=jnp.float32)
        rz1 = jax.nn.sigmoid(gx1[:, :2 * hid] + gh1[:, :2 * hid])   # fused r/z
        r1 = rz1[:, :hid]
        z1 = rz1[:, hid:]
        n1 = jnp.tanh(gx1[:, 2 * hid:] + r1 * (gh1[:, 2 * hid:] + b1hn))
        h1 = (1.0 - z1) * n1 + z1 * h1

        # Layer 2 (rnn_dropout = 0.0 -> no inter-layer dropout).  Its two matmuls
        # are data-independent of each other; left unfused (MXU has slack).
        gx2 = jnp.dot(h1, w2x, preferred_element_type=jnp.float32) + b2
        gh2 = jnp.dot(h2, w2h, preferred_element_type=jnp.float32)
        rz2 = jax.nn.sigmoid(gx2[:, :2 * hid] + gh2[:, :2 * hid])   # fused r/z
        r2 = rz2[:, :hid]
        z2 = rz2[:, hid:]
        n2 = jnp.tanh(gx2[:, 2 * hid:] + r2 * (gh2[:, 2 * hid:] + b2hn))
        h2 = (1.0 - z2) * n2 + z2 * h2

        outs.append(h2)                                        # no store in the loop

    # Single contiguous slab store after the recurrence; no per-step masked stores.
    out_ref[...] = jnp.stack(outs, axis=0)                     # (Lx, N, HID)
    hid_ref[...] = h2                                          # single final write


def rnn_encoder_forward(input_seq, packed_params):
    """input_seq: (N, Lx, Ff) float32, batch_first.

    Returns (gru_out (N, Lx, HID), hidden (N, HID)) — same as RNNEncoder.forward
    with num_layers=2, bidirectional=False.
    """
    assert input_seq.ndim == 3, "dims(input) no es 3, batch first???!!!"
    n, lx, ff = input_seq.shape
    hid = packed_params.shape[1] // 3
    ffp = _round_up8(ff)

    x = input_seq.astype(jnp.float32)
    if ff < ffp:                                               # pad feature dim to 8
        x = jnp.pad(x, ((0, 0), (0, 0), (0, ffp - ff)))
    x_tm = jnp.transpose(x, (1, 0, 2))                         # (Lx, N, Ffp) time-major

    vmem = lambda: pl.BlockSpec(memory_space=pltpu.MemorySpace.VMEM)

    out_tm, hidden = pl.pallas_call(
        _gru2_kernel,
        out_shape=(
            jax.ShapeDtypeStruct((lx, n, hid), jnp.float32),
            jax.ShapeDtypeStruct((n, hid), jnp.float32),
        ),
        in_specs=[vmem(), vmem()],                             # 2 inputs -> 2 DMAs
        out_specs=(vmem(), vmem()),
    )(x_tm, packed_params)

    gru_out = jnp.transpose(out_tm, (1, 0, 2))                 # back to batch-first
    return gru_out, hidden


def init_gru_params(key, input_feature_len, hidden_size):
    """PyTorch nn.GRU(num_layers=2) parameter shapes, U(-1/sqrt(H), 1/sqrt(H))."""
    k = 1.0 / jnp.sqrt(jnp.float32(hidden_size))
    keys = jax.random.split(key, 8)
    u = lambda kk, shape: jax.random.uniform(kk, shape, jnp.float32, -k, k)
    h3 = 3 * hidden_size
    return {
        "wih1": u(keys[0], (h3, input_feature_len)),   # weight_ih_l0
        "whh1": u(keys[1], (h3, hidden_size)),         # weight_hh_l0
        "bih1": u(keys[2], (h3,)),
        "bhh1": u(keys[3], (h3,)),
        "wih2": u(keys[4], (h3, hidden_size)),         # weight_ih_l1
        "whh2": u(keys[5], (h3, hidden_size)),         # weight_hh_l1
        "bih2": u(keys[6], (h3,)),
        "bhh2": u(keys[7], (h3,)),
    }


def pack_gru_params(raw):
    """Pack ALL weights + biases into ONE contiguous (rows, 3H) f32 slab.

    Weights are transposed ((3H, in) -> (in, 3H)); the layer-1 input weight is
    zero-padded to 8 sublanes so every slice offset inside the kernel is 8-aligned.
    The r,z-gate biases of ih and hh always appear summed, so they are folded
    together (plus b_ih_n); the hh n-gate bias stays separate because PyTorch
    computes n = tanh(gx_n + b_in + r * (gh_n + b_hn)).  The (H,) n-gate biases
    are padded to 3H lanes so every row of the slab has the same width.
    """
    hid = raw["whh1"].shape[1]
    h3 = 3 * hid
    ff = raw["wih1"].shape[1]
    ffp = _round_up8(ff)

    w1x = jnp.zeros((ffp, h3), jnp.float32).at[:ff].set(raw["wih1"].T)
    w1h = raw["whh1"].T
    w2x = raw["wih2"].T
    w2h = raw["whh2"].T

    def fold(bih, bhh):
        b = jnp.concatenate([bih[:2 * hid] + bhh[:2 * hid], bih[2 * hid:]])
        bhn = jnp.zeros((h3,), jnp.float32).at[:hid].set(bhh[2 * hid:])
        return b[None, :], bhn[None, :]

    b1, b1hn = fold(raw["bih1"], raw["bhh1"])
    b2, b2hn = fold(raw["bih2"], raw["bhh2"])

    params = jnp.concatenate([w1x, w1h, w2x, w2h, b1, b1hn, b2, b2hn], axis=0)
    pad = (-params.shape[0]) % 8                               # pad rows to 8-multiple
    if pad:
        params = jnp.concatenate([params, jnp.zeros((pad, h3), jnp.float32)], axis=0)
    return params


def _reference_forward(input_seq, raw):
    """Pure-JAX lax.scan reference (textbook PyTorch GRU) for validation."""
    hid = raw["whh1"].shape[1]

    def cell(x, h, wih, whh, bih, bhh):
        gx = x @ wih.T + bih
        gh = h @ whh.T + bhh
        r = jax.nn.sigmoid(gx[:, :hid] + gh[:, :hid])
        z = jax.nn.sigmoid(gx[:, hid:2 * hid] + gh[:, hid:2 * hid])
        n_ = jnp.tanh(gx[:, 2 * hid:] + r * gh[:, 2 * hid:])
        return (1.0 - z) * n_ + z * h

    n = input_seq.shape[0]
    h1 = jnp.zeros((n, hid), jnp.float32)
    h2 = jnp.zeros((n, hid), jnp.float32)
    x_tm = jnp.transpose(input_seq, (1, 0, 2))

    def step(carry, x_t):
        h1, h2 = carry
        h1 = cell(x_t, h1, raw["wih1"], raw["whh1"], raw["bih1"], raw["bhh1"])
        h2 = cell(h1, h2, raw["wih2"], raw["whh2"], raw["bih2"], raw["bhh2"])
        return (h1, h2), h2

    (_, h2), outs = jax.lax.scan(step, (h1, h2), x_tm)
    return jnp.transpose(outs, (1, 0, 2)), h2


if __name__ == "__main__":
    # Module config: rnn_num_layers=2, input_feature_len=4, sequence_len=8, hidden_size=32
    N, LX, FF, HID = 2, 8, 4, 32

    key = jax.random.PRNGKey(0)
    k_x, k_p = jax.random.split(key)
    x = jax.random.normal(k_x, (N, LX, FF), dtype=jnp.float32)
    raw = init_gru_params(k_p, FF, HID)
    packed = pack_gru_params(raw)

    fwd = jax.jit(rnn_encoder_forward)
    gru_out, hidden = fwd(x, packed)
    jax.block_until_ready((gru_out, hidden))

    ref_out, ref_hidden = _reference_forward(x, raw)
    assert gru_out.shape == (N, LX, HID) and hidden.shape == (N, HID)
    assert jnp.allclose(gru_out, ref_out, atol=1e-5, rtol=1e-5)
    assert jnp.allclose(hidden, ref_hidden, atol=1e-5, rtol=1e-5)

    print("KERNEL_OK")
</pallas_src>

<mosaic_0001>
module attributes {stable_mosaic.version = 11 : i64} {
  func.func @_gru2_kernel(%arg0: memref<8x2x8xf32, #tpu.memory_space<vmem>>, %arg1: memref<112x96xf32, #tpu.memory_space<vmem>>, %arg2: memref<8x2x32xf32, #tpu.memory_space<vmem>>, %arg3: memref<2x32xf32, #tpu.memory_space<vmem>>) attributes {dimension_semantics = [], scalar_prefetch = 0 : i64, scratch_operands = 0 : i64, tpu.core_type = #tpu.core_type<tc>} {
    %c0 = arith.constant 0 : index
    %c0_0 = arith.constant 0 : index
    %0 = vector.load %arg1[%c0, %c0_0] : memref<112x96xf32, #tpu.memory_space<vmem>>, vector<8x96xf32>
    %c8 = arith.constant 8 : index
    %c0_1 = arith.constant 0 : index
    %1 = vector.load %arg1[%c8, %c0_1] : memref<112x96xf32, #tpu.memory_space<vmem>>, vector<32x96xf32>
    %c40 = arith.constant 40 : index
    %c0_2 = arith.constant 0 : index
    %2 = vector.load %arg1[%c40, %c0_2] : memref<112x96xf32, #tpu.memory_space<vmem>>, vector<32x96xf32>
    %c72 = arith.constant 72 : index
    %c0_3 = arith.constant 0 : index
    %3 = vector.load %arg1[%c72, %c0_3] : memref<112x96xf32, #tpu.memory_space<vmem>>, vector<32x96xf32>
    %c104 = arith.constant 104 : index
    %c0_4 = arith.constant 0 : index
    %4 = vector.load %arg1[%c104, %c0_4] : memref<112x96xf32, #tpu.memory_space<vmem>>, vector<4x96xf32>
    %5 = vector.extract_strided_slice %4 {offsets = [0, 0], sizes = [1, 96], strides = [1, 1]} : vector<4x96xf32> to vector<1x96xf32>
    %6 = vector.extract_strided_slice %4 {offsets = [1, 0], sizes = [1, 32], strides = [1, 1]} : vector<4x96xf32> to vector<1x32xf32>
    %7 = vector.shape_cast %6 : vector<1x32xf32> to vector<1x32xf32>
    %8 = vector.broadcast %7 : vector<1x32xf32> to vector<2x32xf32>
    %9 = vector.extract_strided_slice %4 {offsets = [2, 0], sizes = [1, 96], strides = [1, 1]} : vector<4x96xf32> to vector<1x96xf32>
    %10 = vector.shape_cast %9 : vector<1x96xf32> to vector<1x96xf32>
    %11 = vector.broadcast %10 : vector<1x96xf32> to vector<2x96xf32>
    %12 = vector.extract_strided_slice %4 {offsets = [3, 0], sizes = [1, 32], strides = [1, 1]} : vector<4x96xf32> to vector<1x32xf32>
    %13 = vector.shape_cast %12 : vector<1x32xf32> to vector<1x32xf32>
    %14 = vector.broadcast %13 : vector<1x32xf32> to vector<2x32xf32>
    %c0_5 = arith.constant 0 : index
    %c0_6 = arith.constant 0 : index
    %c0_7 = arith.constant 0 : index
    %15 = vector.load %arg0[%c0_5, %c0_6, %c0_7] : memref<8x2x8xf32, #tpu.memory_space<vmem>>, vector<8x2x8xf32>
    %16 = vector.shape_cast %15 : vector<8x2x8xf32> to vector<16x8xf32>
    %cst = arith.constant dense<0.000000e+00> : vector<16x96xf32>
    %17 = tpu.matmul %16, %0, %cst {dimension_numbers = #tpu.dot_dimension_numbers<[1], [0], [0], [1], [0, 0, 1, 1], [], []>} : vector<16x8xf32>, vector<8x96xf32>, vector<16x96xf32> -> vector<16x96xf32>
    %18 = vector.broadcast %5 : vector<1x96xf32> to vector<16x96xf32>
    %19 = arith.addf %17, %18 : vector<16x96xf32>
    %20 = vector.shape_cast %19 : vector<16x96xf32> to vector<8x2x96xf32>
    %cst_8 = arith.constant 0.000000e+00 : f32
    %21 = vector.broadcast %cst_8 : f32 to vector<2x32xf32>
    %cst_9 = arith.constant 0.000000e+00 : f32
    %22 = vector.broadcast %cst_9 : f32 to vector<2x32xf32>
    %23 = vector.extract_strided_slice %20 {offsets = [0, 0, 0], sizes = [1, 2, 96], strides = [1, 1, 1]} : vector<8x2x96xf32> to vector<1x2x96xf32>
    %24 = vector.shape_cast %23 : vector<1x2x96xf32> to vector<2x96xf32>
    %cst_10 = arith.constant dense<0.000000e+00> : vector<2x96xf32>
    %25 = tpu.matmul %21, %1, %cst_10 {dimension_numbers = #tpu.dot_dimension_numbers<[1], [0], [0], [1], [0, 0, 1, 1], [], []>} : vector<2x32xf32>, vector<32x96xf32>, vector<2x96xf32> -> vector<2x96xf32>
    %26 = vector.extract_strided_slice %24 {offsets = [0, 0], sizes = [2, 64], strides = [1, 1]} : vector<2x96xf32> to vector<2x64xf32>
    %27 = vector.extract_strided_slice %25 {offsets = [0, 0], sizes = [2, 64], strides = [1, 1]} : vector<2x96xf32> to vector<2x64xf32>
    %28 = arith.addf %26, %27 : vector<2x64xf32>
    %29 = arith.negf %28 : vector<2x64xf32>
    %30 = math.exp %29 : vector<2x64xf32>
    %cst_11 = arith.constant 1.000000e+00 : f32
    %31 = vector.broadcast %cst_11 : f32 to vector<2x64xf32>
    %32 = arith.addf %31, %30 : vector<2x64xf32>
    %33 = arith.divf %31, %32 : vector<2x64xf32>
    %34 = vector.extract_strided_slice %33 {offsets = [0, 0], sizes = [2, 32], strides = [1, 1]} : vector<2x64xf32> to vector<2x32xf32>
    %35 = vector.extract_strided_slice %33 {offsets = [0, 32], sizes = [2, 32], strides = [1, 1]} : vector<2x64xf32> to vector<2x32xf32>
    %36 = vector.extract_strided_slice %24 {offsets = [0, 64], sizes = [2, 32], strides = [1, 1]} : vector<2x96xf32> to vector<2x32xf32>
    %37 = vector.extract_strided_slice %25 {offsets = [0, 64], sizes = [2, 32], strides = [1, 1]} : vector<2x96xf32> to vector<2x32xf32>
    %38 = arith.addf %37, %8 : vector<2x32xf32>
    %39 = arith.mulf %34, %38 : vector<2x32xf32>
    %40 = arith.addf %36, %39 : vector<2x32xf32>
    %41 = math.tanh %40 : vector<2x32xf32>
    %cst_12 = arith.constant 1.000000e+00 : f32
    %42 = vector.broadcast %cst_12 : f32 to vector<2x32xf32>
    %43 = arith.subf %42, %35 : vector<2x32xf32>
    %44 = arith.mulf %43, %41 : vector<2x32xf32>
    %45 = arith.mulf %35, %21 : vector<2x32xf32>
    %46 = arith.addf %44, %45 : vector<2x32xf32>
    %cst_13 = arith.constant dense<0.000000e+00> : vector<2x96xf32>
    %47 = tpu.matmul %46, %2, %cst_13 {dimension_numbers = #tpu.dot_dimension_numbers<[1], [0], [0], [1], [0, 0, 1, 1], [], []>} : vector<2x32xf32>, vector<32x96xf32>, vector<2x96xf32> -> vector<2x96xf32>
    %48 = arith.addf %47, %11 : vector<2x96xf32>
    %cst_14 = arith.constant dense<0.000000e+00> : vector<2x96xf32>
    %49 = tpu.matmul %22, %3, %cst_14 {dimension_numbers = #tpu.dot_dimension_numbers<[1], [0], [0], [1], [0, 0, 1, 1], [], []>} : vector<2x32xf32>, vector<32x96xf32>, vector<2x96xf32> -> vector<2x96xf32>
    %50 = vector.extract_strided_slice %48 {offsets = [0, 0], sizes = [2, 64], strides = [1, 1]} : vector<2x96xf32> to vector<2x64xf32>
    %51 = vector.extract_strided_slice %49 {offsets = [0, 0], sizes = [2, 64], strides = [1, 1]} : vector<2x96xf32> to vector<2x64xf32>
    %52 = arith.addf %50, %51 : vector<2x64xf32>
    %53 = arith.negf %52 : vector<2x64xf32>
    %54 = math.exp %53 : vector<2x64xf32>
    %cst_15 = arith.constant 1.000000e+00 : f32
    %55 = vector.broadcast %cst_15 : f32 to vector<2x64xf32>
    %56 = arith.addf %55, %54 : vector<2x64xf32>
    %57 = arith.divf %55, %56 : vector<2x64xf32>
    %58 = vector.extract_strided_slice %57 {offsets = [0, 0], sizes = [2, 32], strides = [1, 1]} : vector<2x64xf32> to vector<2x32xf32>
    %59 = vector.extract_strided_slice %57 {offsets = [0, 32], sizes = [2, 32], strides = [1, 1]} : vector<2x64xf32> to vector<2x32xf32>
    %60 = vector.extract_strided_slice %48 {offsets = [0, 64], sizes = [2, 32], strides = [1, 1]} : vector<2x96xf32> to vector<2x32xf32>
    %61 = vector.extract_strided_slice %49 {offsets = [0, 64], sizes = [2, 32], strides = [1, 1]} : vector<2x96xf32> to vector<2x32xf32>
    %62 = arith.addf %61, %14 : vector<2x32xf32>
    %63 = arith.mulf %58, %62 : vector<2x32xf32>
    %64 = arith.addf %60, %63 : vector<2x32xf32>
    %65 = math.tanh %64 : vector<2x32xf32>
    %cst_16 = arith.constant 1.000000e+00 : f32
    %66 = vector.broadcast %cst_16 : f32 to vector<2x32xf32>
    %67 = arith.subf %66, %59 : vector<2x32xf32>
    %68 = arith.mulf %67, %65 : vector<2x32xf32>
    %69 = arith.mulf %59, %22 : vector<2x32xf32>
    %70 = arith.addf %68, %69 : vector<2x32xf32>
    %71 = vector.extract_strided_slice %20 {offsets = [1, 0, 0], sizes = [1, 2, 96], strides = [1, 1, 1]} : vector<8x2x96xf32> to vector<1x2x96xf32>
    %72 = vector.shape_cast %71 : vector<1x2x96xf32> to vector<2x96xf32>
    %cst_17 = arith.constant dense<0.000000e+00> : vector<2x96xf32>
    %73 = tpu.matmul %46, %1, %cst_17 {dimension_numbers = #tpu.dot_dimension_numbers<[1], [0], [0], [1], [0, 0, 1, 1], [], []>} : vector<2x32xf32>, vector<32x96xf32>, vector<2x96xf32> -> vector<2x96xf32>
    %74 = vector.extract_strided_slice %72 {offsets = [0, 0], sizes = [2, 64], strides = [1, 1]} : vector<2x96xf32> to vector<2x64xf32>
    %75 = vector.extract_strided_slice %73 {offsets = [0, 0], sizes = [2, 64], strides = [1, 1]} : vector<2x96xf32> to vector<2x64xf32>
    %76 = arith.addf %74, %75 : vector<2x64xf32>
    %77 = arith.negf %76 : vector<2x64xf32>
    %78 = math.exp %77 : vector<2x64xf32>
    %cst_18 = arith.constant 1.000000e+00 : f32
    %79 = vector.broadcast %cst_18 : f32 to vector<2x64xf32>
    %80 = arith.addf %79, %78 : vector<2x64xf32>
    %81 = arith.divf %79, %80 : vector<2x64xf32>
    %82 = vector.extract_strided_slice %81 {offsets = [0, 0], sizes = [2, 32], strides = [1, 1]} : vector<2x64xf32> to vector<2x32xf32>
    %83 = vector.extract_strided_slice %81 {offsets = [0, 32], sizes = [2, 32], strides = [1, 1]} : vector<2x64xf32> to vector<2x32xf32>
    %84 = vector.extract_strided_slice %72 {offsets = [0, 64], sizes = [2, 32], strides = [1, 1]} : vector<2x96xf32> to vector<2x32xf32>
    %85 = vector.extract_strided_slice %73 {offsets = [0, 64], sizes = [2, 32], strides = [1, 1]} : vector<2x96xf32> to vector<2x32xf32>
    %86 = arith.addf %85, %8 : vector<2x32xf32>
    %87 = arith.mulf %82, %86 : vector<2x32xf32>
    %88 = arith.addf %84, %87 : vector<2x32xf32>
    %89 = math.tanh %88 : vector<2x32xf32>
    %cst_19 = arith.constant 1.000000e+00 : f32
    %90 = vector.broadcast %cst_19 : f32 to vector<2x32xf32>
    %91 = arith.subf %90, %83 : vector<2x32xf32>
    %92 = arith.mulf %91, %89 : vector<2x32xf32>
    %93 = arith.mulf %83, %46 : vector<2x32xf32>
    %94 = arith.addf %92, %93 : vector<2x32xf32>
    %cst_20 = arith.constant dense<0.000000e+00> : vector<2x96xf32>
    %95 = tpu.matmul %94, %2, %cst_20 {dimension_numbers = #tpu.dot_dimension_numbers<[1], [0], [0], [1], [0, 0, 1, 1], [], []>} : vector<2x32xf32>, vector<32x96xf32>, vector<2x96xf32> -> vector<2x96xf32>
    %96 = arith.addf %95, %11 : vector<2x96xf32>
    %cst_21 = arith.constant dense<0.000000e+00> : vector<2x96xf32>
    %97 = tpu.matmul %70, %3, %cst_21 {dimension_numbers = #tpu.dot_dimension_numbers<[1], [0], [0], [1], [0, 0, 1, 1], [], []>} : vector<2x32xf32>, vector<32x96xf32>, vector<2x96xf32> -> vector<2x96xf32>
    %98 = vector.extract_strided_slice %96 {offsets = [0, 0], sizes = [2, 64], strides = [1, 1]} : vector<2x96xf32> to vector<2x64xf32>
    %99 = vector.extract_strided_slice %97 {offsets = [0, 0], sizes = [2, 64], strides = [1, 1]} : vector<2x96xf32> to vector<2x64xf32>
    %100 = arith.addf %98, %99 : vector<2x64xf32>
    %101 = arith.negf %100 : vector<2x64xf32>
    %102 = math.exp %101 : vector<2x64xf32>
    %cst_22 = arith.constant 1.000000e+00 : f32
    %103 = vector.broadcast %cst_22 : f32 to vector<2x64xf32>
    %104 = arith.addf %103, %102 : vector<2x64xf32>
    %105 = arith.divf %103, %104 : vector<2x64xf32>
    %106 = vector.extract_strided_slice %105 {offsets = [0, 0], sizes = [2, 32], strides = [1, 1]} : vector<2x64xf32> to vector<2x32xf32>
    %107 = vector.extract_strided_slice %105 {offsets = [0, 32], sizes = [2, 32], strides = [1, 1]} : vector<2x64xf32> to vector<2x32xf32>
    %108 = vector.extract_strided_slice %96 {offsets = [0, 64], sizes = [2, 32], strides = [1, 1]} : vector<2x96xf32> to vector<2x32xf32>
    %109 = vector.extract_strided_slice %97 {offsets = [0, 64], sizes = [2, 32], strides = [1, 1]} : vector<2x96xf32> to vector<2x32xf32>
    %110 = arith.addf %109, %14 : vector<2x32xf32>
    %111 = arith.mulf %106, %110 : vector<2x32xf32>
    %112 = arith.addf %108, %111 : vector<2x32xf32>
    %113 = math.tanh %112 : vector<2x32xf32>
    %cst_23 = arith.constant 1.000000e+00 : f32
    %114 = vector.broadcast %cst_23 : f32 to vector<2x32xf32>
    %115 = arith.subf %114, %107 : vector<2x32xf32>
    %116 = arith.mulf %115, %113 : vector<2x32xf32>
    %117 = arith.mulf %107, %70 : vector<2x32xf32>
    %118 = arith.addf %116, %117 : vector<2x32xf32>
    %119 = vector.extract_strided_slice %20 {offsets = [2, 0, 0], sizes = [1, 2, 96], strides = [1, 1, 1]} : vector<8x2x96xf32> to vector<1x2x96xf32>
    %120 = vector.shape_cast %119 : vector<1x2x96xf32> to vector<2x96xf32>
    %cst_24 = arith.constant dense<0.000000e+00> : vector<2x96xf32>
    %121 = tpu.matmul %94, %1, %cst_24 {dimension_numbers = #tpu.dot_dimension_numbers<[1], [0], [0], [1], [0, 0, 1, 1], [], []>} : vector<2x32xf32>, vector<32x96xf32>, vector<2x96xf32> -> vector<2x96xf32>
    %122 = vector.extract_strided_slice %120 {offsets = [0, 0], sizes = [2, 64], strides = [1, 1]} : vector<2x96xf32> to vector<2x64xf32>
    %123 = vector.extract_strided_slice %121 {offsets = [0, 0], sizes = [2, 64], strides = [1, 1]} : vector<2x96xf32> to vector<2x64xf32>
    %124 = arith.addf %122, %123 : vector<2x64xf32>
    %125 = arith.negf %124 : vector<2x64xf32>
    %126 = math.exp %125 : vector<2x64xf32>
    %cst_25 = arith.constant 1.000000e+00 : f32
    %127 = vector.broadcast %cst_25 : f32 to vector<2x64xf32>
    %128 = arith.addf %127, %126 : vector<2x64xf32>
    %129 = arith.divf %127, %128 : vector<2x64xf32>
    %130 = vector.extract_strided_slice %129 {offsets = [0, 0], sizes = [2, 32], strides = [1, 1]} : vector<2x64xf32> to vector<2x32xf32>
    %131 = vector.extract_strided_slice %129 {offsets = [0, 32], sizes = [2, 32], strides = [1, 1]} : vector<2x64xf32> to vector<2x32xf32>
    %132 = vector.extract_strided_slice %120 {offsets = [0, 64], sizes = [2, 32], strides = [1, 1]} : vector<2x96xf32> to vector<2x32xf32>
    %133 = vector.extract_strided_slice %121 {offsets = [0, 64], sizes = [2, 32], strides = [1, 1]} : vector<2x96xf32> to vector<2x32xf32>
    %134 = arith.addf %133, %8 : vector<2x32xf32>
    %135 = arith.mulf %130, %134 : vector<2x32xf32>
    %136 = arith.addf %132, %135 : vector<2x32xf32>
    %137 = math.tanh %136 : vector<2x32xf32>
    %cst_26 = arith.constant 1.000000e+00 : f32
    %138 = vector.broadcast %cst_26 : f32 to vector<2x32xf32>
    %139 = arith.subf %138, %131 : vector<2x32xf32>
    %140 = arith.mulf %139, %137 : vector<2x32xf32>
    %141 = arith.mulf %131, %94 : vector<2x32xf32>
    %142 = arith.addf %140, %141 : vector<2x32xf32>
    %cst_27 = arith.constant dense<0.000000e+00> : vector<2x96xf32>
    %143 = tpu.matmul %142, %2, %cst_27 {dimension_numbers = #tpu.dot_dimension_numbers<[1], [0], [0], [1], [0, 0, 1, 1], [], []>} : vector<2x32xf32>, vector<32x96xf32>, vector<2x96xf32> -> vector<2x96xf32>
    %144 = arith.addf %143, %11 : vector<2x96xf32>
    %cst_28 = arith.constant dense<0.000000e+00> : vector<2x96xf32>
    %145 = tpu.matmul %118, %3, %cst_28 {dimension_numbers = #tpu.dot_dimension_numbers<[1], [0], [0], [1], [0, 0, 1, 1], [], []>} : vector<2x32xf32>, vector<32x96xf32>, vector<2x96xf32> -> vector<2x96xf32>
    %146 = vector.extract_strided_slice %144 {offsets = [0, 0], sizes = [2, 64], strides = [1, 1]} : vector<2x96xf32> to vector<2x64xf32>
    %147 = vector.extract_strided_slice %145 {offsets = [0, 0], sizes = [2, 64], strides = [1, 1]} : vector<2x96xf32> to vector<2x64xf32>
    %148 = arith.addf %146, %147 : vector<2x64xf32>
    %149 = arith.negf %148 : vector<2x64xf32>
    %150 = math.exp %149 : vector<2x64xf32>
    %cst_29 = arith.constant 1.000000e+00 : f32
    %151 = vector.broadcast %cst_29 : f32 to vector<2x64xf32>
    %152 = arith.addf %151, %150 : vector<2x64xf32>
    %153 = arith.divf %151, %152 : vector<2x64xf32>
    %154 = vector.extract_strided_slice %153 {offsets = [0, 0], sizes = [2, 32], strides = [1, 1]} : vector<2x64xf32> to vector<2x32xf32>
    %155 = vector.extract_strided_slice %153 {offsets = [0, 32], sizes = [2, 32], strides = [1, 1]} : vector<2x64xf32> to vector<2x32xf32>
    %156 = vector.extract_strided_slice %144 {offsets = [0, 64], sizes = [2, 32], strides = [1, 1]} : vector<2x96xf32> to vector<2x32xf32>
    %157 = vector.extract_strided_slice %145 {offsets = [0, 64], sizes = [2, 32], strides = [1, 1]} : vector<2x96xf32> to vector<2x32xf32>
    %158 = arith.addf %157, %14 : vector<2x32xf32>
    %159 = arith.mulf %154, %158 : vector<2x32xf32>
    %160 = arith.addf %156, %159 : vector<2x32xf32>
    %161 = math.tanh %160 : vector<2x32xf32>
    %cst_30 = arith.constant 1.000000e+00 : f32
    %162 = vector.broadcast %cst_30 : f32 to vector<2x32xf32>
    %163 = arith.subf %162, %155 : vector<2x32xf32>
    %164 = arith.mulf %163, %161 : vector<2x32xf32>
    %165 = arith.mulf %155, %118 : vector<2x32xf32>
    %166 = arith.addf %164, %165 : vector<2x32xf32>
    %167 = vector.extract_strided_slice %20 {offsets = [3, 0, 0], sizes = [1, 2, 96], strides = [1, 1, 1]} : vector<8x2x96xf32> to vector<1x2x96xf32>
    %168 = vector.shape_cast %167 : vector<1x2x96xf32> to vector<2x96xf32>
    %cst_31 = arith.constant dense<0.000000e+00> : vector<2x96xf32>
    %169 = tpu.matmul %142, %1, %cst_31 {dimension_numbers = #tpu.dot_dimension_numbers<[1], [0], [0], [1], [0, 0, 1, 1], [], []>} : vector<2x32xf32>, vector<32x96xf32>, vector<2x96xf32> -> vector<2x96xf32>
    %170 = vector.extract_strided_slice %168 {offsets = [0, 0], sizes = [2, 64], strides = [1, 1]} : vector<2x96xf32> to vector<2x64xf32>
    %171 = vector.extract_strided_slice %169 {offsets = [0, 0], sizes = [2, 64], strides = [1, 1]} : vector<2x96xf32> to vector<2x64xf32>
    %172 = arith.addf %170, %171 : vector<2x64xf32>
    %173 = arith.negf %172 : vector<2x64xf32>
    %174 = math.exp %173 : vector<2x64xf32>
    %cst_32 = arith.constant 1.000000e+00 : f32
    %175 = vector.broadcast %cst_32 : f32 to vector<2x64xf32>
    %176 = arith.addf %175, %174 : vector<2x64xf32>
    %177 = arith.divf %175, %176 : vector<2x64xf32>
    %178 = vector.extract_strided_slice %177 {offsets = [0, 0], sizes = [2, 32], strides = [1, 1]} : vector<2x64xf32> to vector<2x32xf32>
    %179 = vector.extract_strided_slice %177 {offsets = [0, 32], sizes = [2, 32], strides = [1, 1]} : vector<2x64xf32> to vector<2x32xf32>
    %180 = vector.extract_strided_slice %168 {offsets = [0, 64], sizes = [2, 32], strides = [1, 1]} : vector<2x96xf32> to vector<2x32xf32>
    %181 = vector.extract_strided_slice %169 {offsets = [0, 64], sizes = [2, 32], strides = [1, 1]} : vector<2x96xf32> to vector<2x32xf32>
    %182 = arith.addf %181, %8 : vector<2x32xf32>
    %183 = arith.mulf %178, %182 : vector<2x32xf32>
    %184 = arith.addf %180, %183 : vector<2x32xf32>
    %185 = math.tanh %184 : vector<2x32xf32>
    %cst_33 = arith.constant 1.000000e+00 : f32
    %186 = vector.broadcast %cst_33 : f32 to vector<2x32xf32>
    %187 = arith.subf %186, %179 : vector<2x32xf32>
    %188 = arith.mulf %187, %185 : vector<2x32xf32>
    %189 = arith.mulf %179, %142 : vector<2x32xf32>
    %190 = arith.addf %188, %189 : vector<2x32xf32>
    %cst_34 = arith.constant dense<0.000000e+00> : vector<2x96xf32>
    %191 = tpu.matmul %190, %2, %cst_34 {dimension_numbers = #tpu.dot_dimension_numbers<[1], [0], [0], [1], [0, 0, 1, 1], [], []>} : vector<2x32xf32>, vector<32x96xf32>, vector<2x96xf32> -> vector<2x96xf32>
    %192 = arith.addf %191, %11 : vector<2x96xf32>
    %cst_35 = arith.constant dense<0.000000e+00> : vector<2x96xf32>
    %193 = tpu.matmul %166, %3, %cst_35 {dimension_numbers = #tpu.dot_dimension_numbers<[1], [0], [0], [1], [0, 0, 1, 1], [], []>} : vector<2x32xf32>, vector<32x96xf32>, vector<2x96xf32> -> vector<2x96xf32>
    %194 = vector.extract_strided_slice %192 {offsets = [0, 0], sizes = [2, 64], strides = [1, 1]} : vector<2x96xf32> to vector<2x64xf32>
    %195 = vector.extract_strided_slice %193 {offsets = [0, 0], sizes = [2, 64], strides = [1, 1]} : vector<2x96xf32> to vector<2x64xf32>
    %196 = arith.addf %194, %195 : vector<2x64xf32>
    %197 = arith.negf %196 : vector<2x64xf32>
    %198 = math.exp %197 : vector<2x64xf32>
    %cst_36 = arith.constant 1.000000e+00 : f32
    %199 = vector.broadcast %cst_36 : f32 to vector<2x64xf32>
    %200 = arith.addf %199, %198 : vector<2x64xf32>
    %201 = arith.divf %199, %200 : vector<2x64xf32>
    %202 = vector.extract_strided_slice %201 {offsets = [0, 0], sizes = [2, 32], strides = [1, 1]} : vector<2x64xf32> to vector<2x32xf32>
    %203 = vector.extract_strided_slice %201 {offsets = [0, 32], sizes = [2, 32], strides = [1, 1]} : vector<2x64xf32> to vector<2x32xf32>
    %204 = vector.extract_strided_slice %192 {offsets = [0, 64], sizes = [2, 32], strides = [1, 1]} : vector<2x96xf32> to vector<2x32xf32>
    %205 = vector.extract_strided_slice %193 {offsets = [0, 64], sizes = [2, 32], strides = [1, 1]} : vector<2x96xf32> to vector<2x32xf32>
    %206 = arith.addf %205, %14 : vector<2x32xf32>
    %207 = arith.mulf %202, %206 : vector<2x32xf32>
    %208 = arith.addf %204, %207 : vector<2x32xf32>
    %209 = math.tanh %208 : vector<2x32xf32>
    %cst_37 = arith.constant 1.000000e+00 : f32
    %210 = vector.broadcast %cst_37 : f32 to vector<2x32xf32>
    %211 = arith.subf %210, %203 : vector<2x32xf32>
    %212 = arith.mulf %211, %209 : vector<2x32xf32>
    %213 = arith.mulf %203, %166 : vector<2x32xf32>
    %214 = arith.addf %212, %213 : vector<2x32xf32>
    %215 = vector.extract_strided_slice %20 {offsets = [4, 0, 0], sizes = [1, 2, 96], strides = [1, 1, 1]} : vector<8x2x96xf32> to vector<1x2x96xf32>
    %216 = vector.shape_cast %215 : vector<1x2x96xf32> to vector<2x96xf32>
    %cst_38 = arith.constant dense<0.000000e+00> : vector<2x96xf32>
    %217 = tpu.matmul %190, %1, %cst_38 {dimension_numbers = #tpu.dot_dimension_numbers<[1], [0], [0], [1], [0, 0, 1, 1], [], []>} : vector<2x32xf32>, vector<32x96xf32>, vector<2x96xf32> -> vector<2x96xf32>
    %218 = vector.extract_strided_slice %216 {offsets = [0, 0], sizes = [2, 64], strides = [1, 1]} : vector<2x96xf32> to vector<2x64xf32>
    %219 = vector.extract_strided_slice %217 {offsets = [0, 0], sizes = [2, 64], strides = [1, 1]} : vector<2x96xf32> to vector<2x64xf32>
    %220 = arith.addf %218, %219 : vector<2x64xf32>
    %221 = arith.negf %220 : vector<2x64xf32>
    %222 = math.exp %221 : vector<2x64xf32>
    %cst_39 = arith.constant 1.000000e+00 : f32
    %223 = vector.broadcast %cst_39 : f32 to vector<2x64xf32>
    %224 = arith.addf %223, %222 : vector<2x64xf32>
    %225 = arith.divf %223, %224 : vector<2x64xf32>
    %226 = vector.extract_strided_slice %225 {offsets = [0, 0], sizes = [2, 32], strides = [1, 1]} : vector<2x64xf32> to vector<2x32xf32>
    %227 = vector.extract_strided_slice %225 {offsets = [0, 32], sizes = [2, 32], strides = [1, 1]} : vector<2x64xf32> to vector<2x32xf32>
    %228 = vector.extract_strided_slice %216 {offsets = [0, 64], sizes = [2, 32], strides = [1, 1]} : vector<2x96xf32> to vector<2x32xf32>
    %229 = vector.extract_strided_slice %217 {offsets = [0, 64], sizes = [2, 32], strides = [1, 1]} : vector<2x96xf32> to vector<2x32xf32>
    %230 = arith.addf %229, %8 : vector<2x32xf32>
    %231 = arith.mulf %226, %230 : vector<2x32xf32>
    %232 = arith.addf %228, %231 : vector<2x32xf32>
    %233 = math.tanh %232 : vector<2x32xf32>
    %cst_40 = arith.constant 1.000000e+00 : f32
    %234 = vector.broadcast %cst_40 : f32 to vector<2x32xf32>
    %235 = arith.subf %234, %227 : vector<2x32xf32>
    %236 = arith.mulf %235, %233 : vector<2x32xf32>
    %237 = arith.mulf %227, %190 : vector<2x32xf32>
    %238 = arith.addf %236, %237 : vector<2x32xf32>
    %cst_41 = arith.constant dense<0.000000e+00> : vector<2x96xf32>
    %239 = tpu.matmul %238, %2, %cst_41 {dimension_numbers = #tpu.dot_dimension_numbers<[1], [0], [0], [1], [0, 0, 1, 1], [], []>} : vector<2x32xf32>, vector<32x96xf32>, vector<2x96xf32> -> vector<2x96xf32>
    %240 = arith.addf %239, %11 : vector<2x96xf32>
    %cst_42 = arith.constant dense<0.000000e+00> : vector<2x96xf32>
    %241 = tpu.matmul %214, %3, %cst_42 {dimension_numbers = #tpu.dot_dimension_numbers<[1], [0], [0], [1], [0, 0, 1, 1], [], []>} : vector<2x32xf32>, vector<32x96xf32>, vector<2x96xf32> -> vector<2x96xf32>
    %242 = vector.extract_strided_slice %240 {offsets = [0, 0], sizes = [2, 64], strides = [1, 1]} : vector<2x96xf32> to vector<2x64xf32>
    %243 = vector.extract_strided_slice %241 {offsets = [0, 0], sizes = [2, 64], strides = [1, 1]} : vector<2x96xf32> to vector<2x64xf32>
    %244 = arith.addf %242, %243 : vector<2x64xf32>
    %245 = arith.negf %244 : vector<2x64xf32>
    %246 = math.exp %245 : vector<2x64xf32>
    %cst_43 = arith.constant 1.000000e+00 : f32
    %247 = vector.broadcast %cst_43 : f32 to vector<2x64xf32>
    %248 = arith.addf %247, %246 : vector<2x64xf32>
    %249 = arith.divf %247, %248 : vector<2x64xf32>
    %250 = vector.extract_strided_slice %249 {offsets = [0, 0], sizes = [2, 32], strides = [1, 1]} : vector<2x64xf32> to vector<2x32xf32>
    %251 = vector.extract_strided_slice %249 {offsets = [0, 32], sizes = [2, 32], strides = [1, 1]} : vector<2x64xf32> to vector<2x32xf32>
    %252 = vector.extract_strided_slice %240 {offsets = [0, 64], sizes = [2, 32], strides = [1, 1]} : vector<2x96xf32> to vector<2x32xf32>
    %253 = vector.extract_strided_slice %241 {offsets = [0, 64], sizes = [2, 32], strides = [1, 1]} : vector<2x96xf32> to vector<2x32xf32>
    %254 = arith.addf %253, %14 : vector<2x32xf32>
    %255 = arith.mulf %250, %254 : vector<2x32xf32>
    %256 = arith.addf %252, %255 : vector<2x32xf32>
    %257 = math.tanh %256 : vector<2x32xf32>
    %cst_44 = arith.constant 1.000000e+00 : f32
    %258 = vector.broadcast %cst_44 : f32 to vector<2x32xf32>
    %259 = arith.subf %258, %251 : vector<2x32xf32>
    %260 = arith.mulf %259, %257 : vector<2x32xf32>
    %261 = arith.mulf %251, %214 : vector<2x32xf32>
    %262 = arith.addf %260, %261 : vector<2x32xf32>
    %263 = vector.extract_strided_slice %20 {offsets = [5, 0, 0], sizes = [1, 2, 96], strides = [1, 1, 1]} : vector<8x2x96xf32> to vector<1x2x96xf32>
    %264 = vector.shape_cast %263 : vector<1x2x96xf32> to vector<2x96xf32>
    %cst_45 = arith.constant dense<0.000000e+00> : vector<2x96xf32>
    %265 = tpu.matmul %238, %1, %cst_45 {dimension_numbers = #tpu.dot_dimension_numbers<[1], [0], [0], [1], [0, 0, 1, 1], [], []>} : vector<2x32xf32>, vector<32x96xf32>, vector<2x96xf32> -> vector<2x96xf32>
    %266 = vector.extract_strided_slice %264 {offsets = [0, 0], sizes = [2, 64], strides = [1, 1]} : vector<2x96xf32> to vector<2x64xf32>
    %267 = vector.extract_strided_slice %265 {offsets = [0, 0], sizes = [2, 64], strides = [1, 1]} : vector<2x96xf32> to vector<2x64xf32>
    %268 = arith.addf %266, %267 : vector<2x64xf32>
    %269 = arith.negf %268 : vector<2x64xf32>
    %270 = math.exp %269 : vector<2x64xf32>
    %cst_46 = arith.constant 1.000000e+00 : f32
    %271 = vector.broadcast %cst_46 : f32 to vector<2x64xf32>
    %272 = arith.addf %271, %270 : vector<2x64xf32>
    %273 = arith.divf %271, %272 : vector<2x64xf32>
    %274 = vector.extract_strided_slice %273 {offsets = [0, 0], sizes = [2, 32], strides = [1, 1]} : vector<2x64xf32> to vector<2x32xf32>
    %275 = vector.extract_strided_slice %273 {offsets = [0, 32], sizes = [2, 32], strides = [1, 1]} : vector<2x64xf32> to vector<2x32xf32>
    %276 = vector.extract_strided_slice %264 {offsets = [0, 64], sizes = [2, 32], strides = [1, 1]} : vector<2x96xf32> to vector<2x32xf32>
    %277 = vector.extract_strided_slice %265 {offsets = [0, 64], sizes = [2, 32], strides = [1, 1]} : vector<2x96xf32> to vector<2x32xf32>
    %278 = arith.addf %277, %8 : vector<2x32xf32>
    %279 = arith.mulf %274, %278 : vector<2x32xf32>
    %280 = arith.addf %276, %279 : vector<2x32xf32>
    %281 = math.tanh %280 : vector<2x32xf32>
    %cst_47 = arith.constant 1.000000e+00 : f32
    %282 = vector.broadcast %cst_47 : f32 to vector<2x32xf32>
    %283 = arith.subf %282, %275 : vector<2x32xf32>
    %284 = arith.mulf %283, %281 : vector<2x32xf32>
    %285 = arith.mulf %275, %238 : vector<2x32xf32>
    %286 = arith.addf %284, %285 : vector<2x32xf32>
    %cst_48 = arith.constant dense<0.000000e+00> : vector<2x96xf32>
    %287 = tpu.matmul %286, %2, %cst_48 {dimension_numbers = #tpu.dot_dimension_numbers<[1], [0], [0], [1], [0, 0, 1, 1], [], []>} : vector<2x32xf32>, vector<32x96xf32>, vector<2x96xf32> -> vector<2x96xf32>
    %288 = arith.addf %287, %11 : vector<2x96xf32>
    %cst_49 = arith.constant dense<0.000000e+00> : vector<2x96xf32>
    %289 = tpu.matmul %262, %3, %cst_49 {dimension_numbers = #tpu.dot_dimension_numbers<[1], [0], [0], [1], [0, 0, 1, 1], [], []>} : vector<2x32xf32>, vector<32x96xf32>, vector<2x96xf32> -> vector<2x96xf32>
    %290 = vector.extract_strided_slice %288 {offsets = [0, 0], sizes = [2, 64], strides = [1, 1]} : vector<2x96xf32> to vector<2x64xf32>
    %291 = vector.extract_strided_slice %289 {offsets = [0, 0], sizes = [2, 64], strides = [1, 1]} : vector<2x96xf32> to vector<2x64xf32>
    %292 = arith.addf %290, %291 : vector<2x64xf32>
    %293 = arith.negf %292 : vector<2x64xf32>
    %294 = math.exp %293 : vector<2x64xf32>
    %cst_50 = arith.constant 1.000000e+00 : f32
    %295 = vector.broadcast %cst_50 : f32 to vector<2x64xf32>
    %296 = arith.addf %295, %294 : vector<2x64xf32>
    %297 = arith.divf %295, %296 : vector<2x64xf32>
    %298 = vector.extract_strided_slice %297 {offsets = [0, 0], sizes = [2, 32], strides = [1, 1]} : vector<2x64xf32> to vector<2x32xf32>
    %299 = vector.extract_strided_slice %297 {offsets = [0, 32], sizes = [2, 32], strides = [1, 1]} : vector<2x64xf32> to vector<2x32xf32>
    %300 = vector.extract_strided_slice %288 {offsets = [0, 64], sizes = [2, 32], strides = [1, 1]} : vector<2x96xf32> to vector<2x32xf32>
    %301 = vector.extract_strided_slice %289 {offsets = [0, 64], sizes = [2, 32], strides = [1, 1]} : vector<2x96xf32> to vector<2x32xf32>
    %302 = arith.addf %301, %14 : vector<2x32xf32>
    %303 = arith.mulf %298, %302 : vector<2x32xf32>
    %304 = arith.addf %300, %303 : vector<2x32xf32>
    %305 = math.tanh %304 : vector<2x32xf32>
    %cst_51 = arith.constant 1.000000e+00 : f32
    %306 = vector.broadcast %cst_51 : f32 to vector<2x32xf32>
    %307 = arith.subf %306, %299 : vector<2x32xf32>
    %308 = arith.mulf %307, %305 : vector<2x32xf32>
    %309 = arith.mulf %299, %262 : vector<2x32xf32>
    %310 = arith.addf %308, %309 : vector<2x32xf32>
    %311 = vector.extract_strided_slice %20 {offsets = [6, 0, 0], sizes = [1, 2, 96], strides = [1, 1, 1]} : vector<8x2x96xf32> to vector<1x2x96xf32>
    %312 = vector.shape_cast %311 : vector<1x2x96xf32> to vector<2x96xf32>
    %cst_52 = arith.constant dense<0.000000e+00> : vector<2x96xf32>
    %313 = tpu.matmul %286, %1, %cst_52 {dimension_numbers = #tpu.dot_dimension_numbers<[1], [0], [0], [1], [0, 0, 1, 1], [], []>} : vector<2x32xf32>, vector<32x96xf32>, vector<2x96xf32> -> vector<2x96xf32>
    %314 = vector.extract_strided_slice %312 {offsets = [0, 0], sizes = [2, 64], strides = [1, 1]} : vector<2x96xf32> to vector<2x64xf32>
    %315 = vector.extract_strided_slice %313 {offsets = [0, 0], sizes = [2, 64], strides = [1, 1]} : vector<2x96xf32> to vector<2x64xf32>
    %316 = arith.addf %314, %315 : vector<2x64xf32>
    %317 = arith.negf %316 : vector<2x64xf32>
    %318 = math.exp %317 : vector<2x64xf32>
    %cst_53 = arith.constant 1.000000e+00 : f32
    %319 = vector.broadcast %cst_53 : f32 to vector<2x64xf32>
    %320 = arith.addf %319, %318 : vector<2x64xf32>
    %321 = arith.divf %319, %320 : vector<2x64xf32>
    %322 = vector.extract_strided_slice %321 {offsets = [0, 0], sizes = [2, 32], strides = [1, 1]} : vector<2x64xf32> to vector<2x32xf32>
    %323 = vector.extract_strided_slice %321 {offsets = [0, 32], sizes = [2, 32], strides = [1, 1]} : vector<2x64xf32> to vector<2x32xf32>
    %324 = vector.extract_strided_slice %312 {offsets = [0, 64], sizes = [2, 32], strides = [1, 1]} : vector<2x96xf32> to vector<2x32xf32>
    %325 = vector.extract_strided_slice %313 {offsets = [0, 64], sizes = [2, 32], strides = [1, 1]} : vector<2x96xf32> to vector<2x32xf32>
    %326 = arith.addf %325, %8 : vector<2x32xf32>
    %327 = arith.mulf %322, %326 : vector<2x32xf32>
    %328 = arith.addf %324, %327 : vector<2x32xf32>
    %329 = math.tanh %328 : vector<2x32xf32>
    %cst_54 = arith.constant 1.000000e+00 : f32
    %330 = vector.broadcast %cst_54 : f32 to vector<2x32xf32>
    %331 = arith.subf %330, %323 : vector<2x32xf32>
    %332 = arith.mulf %331, %329 : vector<2x32xf32>
    %333 = arith.mulf %323, %286 : vector<2x32xf32>
    %334 = arith.addf %332, %333 : vector<2x32xf32>
    %cst_55 = arith.constant dense<0.000000e+00> : vector<2x96xf32>
    %335 = tpu.matmul %334, %2, %cst_55 {dimension_numbers = #tpu.dot_dimension_numbers<[1], [0], [0], [1], [0, 0, 1, 1], [], []>} : vector<2x32xf32>, vector<32x96xf32>, vector<2x96xf32> -> vector<2x96xf32>
    %336 = arith.addf %335, %11 : vector<2x96xf32>
    %cst_56 = arith.constant dense<0.000000e+00> : vector<2x96xf32>
    %337 = tpu.matmul %310, %3, %cst_56 {dimension_numbers = #tpu.dot_dimension_numbers<[1], [0], [0], [1], [0, 0, 1, 1], [], []>} : vector<2x32xf32>, vector<32x96xf32>, vector<2x96xf32> -> vector<2x96xf32>
    %338 = vector.extract_strided_slice %336 {offsets = [0, 0], sizes = [2, 64], strides = [1, 1]} : vector<2x96xf32> to vector<2x64xf32>
    %339 = vector.extract_strided_slice %337 {offsets = [0, 0], sizes = [2, 64], strides = [1, 1]} : vector<2x96xf32> to vector<2x64xf32>
    %340 = arith.addf %338, %339 : vector<2x64xf32>
    %341 = arith.negf %340 : vector<2x64xf32>
    %342 = math.exp %341 : vector<2x64xf32>
    %cst_57 = arith.constant 1.000000e+00 : f32
    %343 = vector.broadcast %cst_57 : f32 to vector<2x64xf32>
    %344 = arith.addf %343, %342 : vector<2x64xf32>
    %345 = arith.divf %343, %344 : vector<2x64xf32>
    %346 = vector.extract_strided_slice %345 {offsets = [0, 0], sizes = [2, 32], strides = [1, 1]} : vector<2x64xf32> to vector<2x32xf32>
    %347 = vector.extract_strided_slice %345 {offsets = [0, 32], sizes = [2, 32], strides = [1, 1]} : vector<2x64xf32> to vector<2x32xf32>
    %348 = vector.extract_strided_slice %336 {offsets = [0, 64], sizes = [2, 32], strides = [1, 1]} : vector<2x96xf32> to vector<2x32xf32>
    %349 = vector.extract_strided_slice %337 {offsets = [0, 64], sizes = [2, 32], strides = [1, 1]} : vector<2x96xf32> to vector<2x32xf32>
    %350 = arith.addf %349, %14 : vector<2x32xf32>
    %351 = arith.mulf %346, %350 : vector<2x32xf32>
    %352 = arith.addf %348, %351 : vector<2x32xf32>
    %353 = math.tanh %352 : vector<2x32xf32>
    %cst_58 = arith.constant 1.000000e+00 : f32
    %354 = vector.broadcast %cst_58 : f32 to vector<2x32xf32>
    %355 = arith.subf %354, %347 : vector<2x32xf32>
    %356 = arith.mulf %355, %353 : vector<2x32xf32>
    %357 = arith.mulf %347, %310 : vector<2x32xf32>
    %358 = arith.addf %356, %357 : vector<2x32xf32>
    %359 = vector.extract_strided_slice %20 {offsets = [7, 0, 0], sizes = [1, 2, 96], strides = [1, 1, 1]} : vector<8x2x96xf32> to vector<1x2x96xf32>
    %360 = vector.shape_cast %359 : vector<1x2x96xf32> to vector<2x96xf32>
    %cst_59 = arith.constant dense<0.000000e+00> : vector<2x96xf32>
    %361 = tpu.matmul %334, %1, %cst_59 {dimension_numbers = #tpu.dot_dimension_numbers<[1], [0], [0], [1], [0, 0, 1, 1], [], []>} : vector<2x32xf32>, vector<32x96xf32>, vector<2x96xf32> -> vector<2x96xf32>
    %362 = vector.extract_strided_slice %360 {offsets = [0, 0], sizes = [2, 64], strides = [1, 1]} : vector<2x96xf32> to vector<2x64xf32>
    %363 = vector.extract_strided_slice %361 {offsets = [0, 0], sizes = [2, 64], strides = [1, 1]} : vector<2x96xf32> to vector<2x64xf32>
    %364 = arith.addf %362, %363 : vector<2x64xf32>
    %365 = arith.negf %364 : vector<2x64xf32>
    %366 = math.exp %365 : vector<2x64xf32>
    %cst_60 = arith.constant 1.000000e+00 : f32
    %367 = vector.broadcast %cst_60 : f32 to vector<2x64xf32>
    %368 = arith.addf %367, %366 : vector<2x64xf32>
    %369 = arith.divf %367, %368 : vector<2x64xf32>
    %370 = vector.extract_strided_slice %369 {offsets = [0, 0], sizes = [2, 32], strides = [1, 1]} : vector<2x64xf32> to vector<2x32xf32>
    %371 = vector.extract_strided_slice %369 {offsets = [0, 32], sizes = [2, 32], strides = [1, 1]} : vector<2x64xf32> to vector<2x32xf32>
    %372 = vector.extract_strided_slice %360 {offsets = [0, 64], sizes = [2, 32], strides = [1, 1]} : vector<2x96xf32> to vector<2x32xf32>
    %373 = vector.extract_strided_slice %361 {offsets = [0, 64], sizes = [2, 32], strides = [1, 1]} : vector<2x96xf32> to vector<2x32xf32>
    %374 = arith.addf %373, %8 : vector<2x32xf32>
    %375 = arith.mulf %370, %374 : vector<2x32xf32>
    %376 = arith.addf %372, %375 : vector<2x32xf32>
    %377 = math.tanh %376 : vector<2x32xf32>
    %cst_61 = arith.constant 1.000000e+00 : f32
    %378 = vector.broadcast %cst_61 : f32 to vector<2x32xf32>
    %379 = arith.subf %378, %371 : vector<2x32xf32>
    %380 = arith.mulf %379, %377 : vector<2x32xf32>
    %381 = arith.mulf %371, %334 : vector<2x32xf32>
    %382 = arith.addf %380, %381 : vector<2x32xf32>
    %cst_62 = arith.constant dense<0.000000e+00> : vector<2x96xf32>
    %383 = tpu.matmul %382, %2, %cst_62 {dimension_numbers = #tpu.dot_dimension_numbers<[1], [0], [0], [1], [0, 0, 1, 1], [], []>} : vector<2x32xf32>, vector<32x96xf32>, vector<2x96xf32> -> vector<2x96xf32>
    %384 = arith.addf %383, %11 : vector<2x96xf32>
    %cst_63 = arith.constant dense<0.000000e+00> : vector<2x96xf32>
    %385 = tpu.matmul %358, %3, %cst_63 {dimension_numbers = #tpu.dot_dimension_numbers<[1], [0], [0], [1], [0, 0, 1, 1], [], []>} : vector<2x32xf32>, vector<32x96xf32>, vector<2x96xf32> -> vector<2x96xf32>
    %386 = vector.extract_strided_slice %384 {offsets = [0, 0], sizes = [2, 64], strides = [1, 1]} : vector<2x96xf32> to vector<2x64xf32>
    %387 = vector.extract_strided_slice %385 {offsets = [0, 0], sizes = [2, 64], strides = [1, 1]} : vector<2x96xf32> to vector<2x64xf32>
    %388 = arith.addf %386, %387 : vector<2x64xf32>
    %389 = arith.negf %388 : vector<2x64xf32>
    %390 = math.exp %389 : vector<2x64xf32>
    %cst_64 = arith.constant 1.000000e+00 : f32
    %391 = vector.broadcast %cst_64 : f32 to vector<2x64xf32>
    %392 = arith.addf %391, %390 : vector<2x64xf32>
    %393 = arith.divf %391, %392 : vector<2x64xf32>
    %394 = vector.extract_strided_slice %393 {offsets = [0, 0], sizes = [2, 32], strides = [1, 1]} : vector<2x64xf32> to vector<2x32xf32>
    %395 = vector.extract_strided_slice %393 {offsets = [0, 32], sizes = [2, 32], strides = [1, 1]} : vector<2x64xf32> to vector<2x32xf32>
    %396 = vector.extract_strided_slice %384 {offsets = [0, 64], sizes = [2, 32], strides = [1, 1]} : vector<2x96xf32> to vector<2x32xf32>
    %397 = vector.extract_strided_slice %385 {offsets = [0, 64], sizes = [2, 32], strides = [1, 1]} : vector<2x96xf32> to vector<2x32xf32>
    %398 = arith.addf %397, %14 : vector<2x32xf32>
    %399 = arith.mulf %394, %398 : vector<2x32xf32>
    %400 = arith.addf %396, %399 : vector<2x32xf32>
    %401 = math.tanh %400 : vector<2x32xf32>
    %cst_65 = arith.constant 1.000000e+00 : f32
    %402 = vector.broadcast %cst_65 : f32 to vector<2x32xf32>
    %403 = arith.subf %402, %395 : vector<2x32xf32>
    %404 = arith.mulf %403, %401 : vector<2x32xf32>
    %405 = arith.mulf %395, %358 : vector<2x32xf32>
    %406 = arith.addf %404, %405 : vector<2x32xf32>
    %407 = vector.shape_cast %70 : vector<2x32xf32> to vector<1x2x32xf32>
    %408 = vector.shape_cast %118 : vector<2x32xf32> to vector<1x2x32xf32>
    %409 = vector.shape_cast %166 : vector<2x32xf32> to vector<1x2x32xf32>
    %410 = vector.shape_cast %214 : vector<2x32xf32> to vector<1x2x32xf32>
    %411 = vector.shape_cast %262 : vector<2x32xf32> to vector<1x2x32xf32>
    %412 = vector.shape_cast %310 : vector<2x32xf32> to vector<1x2x32xf32>
    %413 = vector.shape_cast %358 : vector<2x32xf32> to vector<1x2x32xf32>
    %414 = vector.shape_cast %406 : vector<2x32xf32> to vector<1x2x32xf32>
    %415 = tpu.concatenate %407, %408, %409, %410, %411, %412, %413, %414 in 0 : vector<1x2x32xf32>, vector<1x2x32xf32>, vector<1x2x32xf32>, vector<1x2x32xf32>, vector<1x2x32xf32>, vector<1x2x32xf32>, vector<1x2x32xf32>, vector<1x2x32xf32> -> vector<8x2x32xf32>
    %c0_66 = arith.constant 0 : index
    %c0_67 = arith.constant 0 : index
    %c0_68 = arith.constant 0 : index
    %416 = vector.load %arg2[%c0_66, %c0_67, %c0_68] : memref<8x2x32xf32, #tpu.memory_space<vmem>>, vector<8x2x32xf32>
    tpu.vector_store %arg2[%c0_66, %c0_67, %c0_68], %415 {strides = array<i32>} : memref<8x2x32xf32, #tpu.memory_space<vmem>>, vector<8x2x32xf32>,
    %c0_69 = arith.constant 0 : index
    %c0_70 = arith.constant 0 : index
    %417 = vector.load %arg3[%c0_69, %c0_70] : memref<2x32xf32, #tpu.memory_space<vmem>>, vector<2x32xf32>
    tpu.vector_store %arg3[%c0_69, %c0_70], %406 {strides = array<i32>} : memref<2x32xf32, #tpu.memory_space<vmem>>, vector<2x32xf32>,
    return
  }
}

</mosaic_0001>

<bundles_post_ra>
// kernel: rnn_encoder_forward.1
= control target key start
LH: loop header
LB: loop body
LE: loop exit
PB: predicated region body
PF: predicated region fallthrough
CT: control target
= control target key end

     0   :  { %v28_v1 = vlaneseq  ;;  %v3136_v2 = vmov 0.0   ;;  %vm3137_vm0 = vmmov 0   ;;  %v3138_v10 = vmov 1983009808   ;;  %s3812_s0 = inlined_call_operand.vmem [shape: f32[8,2,8], index: 0, kind: input, shape index: {}]   ;;  %s3813_s1 = inlined_call_operand.vmem [shape: f32[112,96], index: 1, kind: input, shape index: {}]   ;;  %s3814_s2 = inlined_call_operand.vmem [shape: f32[8,2,32], index: 2, kind: output, shape index: {0}]   ;;  %s3815_s3 = inlined_call_operand.hbm [shape: f32[2,32], index: 3, kind: output, shape index: {1}]  }
   0x1   :  { %v3165_v0 = vld [vmem:[%s3813_s1 + $0x20] sm:$0xff]  ;;  %2736 = vmatprep.subr.mxu1 %v3136_v2  ;;  %v3171_v3 = vld [vmem:[%s3813_s1 + $0x18] sm:$0xff]  ;;  %2744 = vmatprep.mubr.msk.f32.mxu1 %vm3137_vm0, %v3136_v2  ;;  %v3185_v6 = vld [vmem:[%s3813_s1 + $0x10] sm:$0xff]  ;;  %v63_v11 = vunpack.c.l.s4 %v3138_v10 }
   0x2   :  { %v14_v4 = vld [vmem:[%s3813_s1] sm:$0xff]  ;;  %2737 = vmatpush3.msra.mxu1 %v3165_v0  ;;  %v3187_v7 = vshrl.u32 %v28_v1, 7  ;;  %v44_v13 = vld [vmem:[%s3812_s0 + $0x8] sm:$0x3]  ;;  %v45_v14 = vld [vmem:[%s3812_s0 + $0xa] sm:$0x3] }
   0x3   :  { %v40_v5 = vld [vmem:[%s3812_s0] sm:$0x3]  ;;  %2731 = vmatprep.subr.mxu0 %v14_v4  ;;  %v41_v8 = vld [vmem:[%s3812_s0 + $0x2] sm:$0x3]  ;;  %v42_v9 = vld [vmem:[%s3812_s0 + $0x4] sm:$0x3]  ;;  %2738 = vmatprep.subr.mxu1 %v3136_v2  ;;  %v64_v17 = vunpack.c.0.s8 %v63_v11  ;;  %v77_v20 = vcombine.low %v44_v13, %v45_v14 }
   0x4   :  { %2732 = vmatpush3.msra.mxu0 %v14_v4  ;;  %v43_v12 = vld [vmem:[%s3812_s0 + $0x6] sm:$0x3]  ;;  %2739 = vmatpush3.msra.mxu1 %v3171_v3  ;;  %v60_v15 = vcombine.low %v40_v5, %v41_v8  ;;  %v46_v18 = vld [vmem:[%s3812_s0 + $0xc] sm:$0x3]  ;;  %v47_v19 = vld [vmem:[%s3812_s0 + $0xe] sm:$0x3] }
   0x5   :  { %v61_v16 = vcombine.low %v42_v9, %v43_v12  ;;  %v3215_v21 = vld [vmem:[%s3813_s1 + $0x68] sm:$0xf]  ;;  %2747 = vmatprep.subr.mxu0 %v3136_v2  ;;  %2740 = vmatprep.subr.mxu1 %v3136_v2  ;;  %v78_v23 = vcombine.low %v46_v18, %v47_v19  ;;  %v30_v24 = vsub.s32 1, %v3187_v7 }
   0x6   :  { %v3222_v22 = vld [vmem:[%s3813_s1 + $0x8] sm:$0xff] }
   0x7   :  { %9 = vsyncpa [#allocation3], 0  ;;  %2741 = vmatpush3.msra.mxu1 %v3185_v6  ;;  %v3227_v25 = vsub.s32 %v64_v17, %v3187_v7  ;;  %v31_v26 = vrot.slane %v3215_v21, %v30_v24  ;;  %vm94_vm1 = vcmask 64512   ;;  %s3139_s0 = smov 64   ;;  %v50_v34 = vsub.s32 0, %v3187_v7  ;;  %v3264_v54 = vld [vmem:[%s3813_s1 + $0x60] sm:$0xff] }
   0x8   :  { %2742 = vmatprep.subr.mxu1 %v3136_v2  ;;  %v3269_v55 = vld [vmem:[%s3813_s1 + $0x58] sm:$0xff]  ;;  %v3275_v56 = vld [vmem:[%s3813_s1 + $0x40] sm:$0xff]  ;;  %v3286_v58 = vld [vmem:[%s3813_s1 + $0x50] sm:$0xff]  ;;  %v38_v60 = vsub.s32 3, %v3187_v7  ;;  %s3140_s29 = smov 96   ;;  %vm218_vm2 = vcmask 261120  }
   0x9   :  { %2743 = vmatpush3.msra.mxu1 %v3222_v22  ;;  %v68_v27 = vrot.slane %v60_v15, %v3227_v25  ;;  %v75_v28 = vrot.slane %v61_v16, %v3227_v25  ;;  %v85_v29 = vrot.slane %v77_v20, %v3227_v25  ;;  %v92_v30 = vrot.slane %v78_v23, %v3227_v25  ;;  %v3280_v57 = vld [vmem:[%s3813_s1 + $0x38] sm:$0xff]  ;;  %v3294_v59 = vld [vmem:[%s3813_s1 + $0x30] sm:$0xff]  ;;  %v3301_v61 = vld [vmem:[%s3813_s1 + $0x48] sm:$0xff]  ;;  %s3141_s14 = smov [#allocation2]  }
   0xa   :  { %2745 = vmatmul.mubr.f32.vlgmr.msra.gmra.mxu1 %v3136_v2  ;;  %300 = vrot.lane.b32.xlu0 %v31_v26, %s3139_s0  ;;  %v51_v39 = vrot.slane %v3215_v21, %v50_v34  ;;  %v3311_v63 = vld [vmem:[%s3813_s1 + $0x28] sm:$0xff]  ;;  %v39_v1 = vrot.slane %v3215_v21, %v38_v60  ;;  %v34_v17 = vsub.s32 2, %v3187_v7  ;;  %vm2540_vm3 = vcmask 254976   ;;  %s2558_s15 = sshll.u32 %s3141_s14, 4  ;;  %s2559_s15 = int_to_ptr.vmem [resolvable:$true] %s2558_s15 }
   0xb   :  { %v76_v31 = vcombine.low %v68_v27, %v75_v28  ;;  %v93_v32 = vcombine.low %v85_v29, %v92_v30  ;;  %2758 = vmatprep.subr.mxu1 %v3136_v2  ;;  %2766 = vmatprep.mubr.msk.f32.mxu1 %vm3137_vm0, %v3136_v2  ;;  %s3114_s17 = scalar_lea.vmem %s2559_s15, 32  ;;  %p3119_p1 = scmp.lt.s32.totalorder %s2559_s15, %s2559_s15 }
   0xc   :  { %2759 = vmatpush3.msra.mxu1 %v3264_v54  ;;  %v3365_v18 = vrot.slane %v3215_v21, %v34_v17  ;;  %p3115_p0 = scmp.ne.s32.totalorder %s2559_s15, %s3114_s17  ;;  %p3120_p2 = scmp.lt.s32.totalorder %s3114_s17, %s3114_s17 }
   0xd   :  { %2733 = vmatprep.mubr.msk.f32.mxu0 %vm94_vm1, %v76_v31  ;;  %2760 = vmatprep.subr.mxu1 %v3136_v2 }
   0xe   :  { %2734 = vmatmul.mubr.msk.f32.vlgmr.msra.gmra.mxu0 %vm94_vm1, %v93_v32  ;;  %2761 = vmatpush3.msra.mxu1 %v3269_v55  ;;  %p3121_p3 = por %p3120_p2, %p3119_p1 }
   0xf   :  { %2755 = vmatprep.mubr.msk.f32.mxu0 %vm3137_vm0, %v3136_v2  ;;  %2748 = vmatpush3.msra.mxu0 %v3275_v56 }
  0x10   :  { %2749 = vmatprep.subr.mxu0 %v3136_v2  ;;  %2762 = vmatprep.subr.mxu1 %v3136_v2  ;;  %p3122_p4 = pnand %p3121_p3, %p3115_p0 }
  0x11   :  { %2750 = vmatpush3.msra.mxu0 %v3280_v57  ;;  %2763 = vmatpush3.msra.mxu1 %v3286_v58 }
  0x12   :  { %2751 = vmatprep.subr.mxu0 %v3136_v2  ;;  %2764 = vmatprep.subr.mxu1 %v3136_v2 }
  0x13   :  { %2752 = vmatpush3.msra.mxu0 %v3294_v59  ;;  %2765 = vmatpush3.msra.mxu1 %v3301_v61 }
  0x14   :  { %2767 = vmatmul.mubr.f32.vlgmr.msra.gmra.mxu1 %v3136_v2  ;;  %2753 = vmatprep.subr.mxu0 %v3136_v2 }
  0x15   :  { %2754 = vmatpush3.msra.mxu0 %v3311_v63  ;;  %2780 = vmatprep.subr.mxu1 %v3136_v2 }
  0x16   :  { %2769 = vmatprep.subr.mxu0 %v3136_v2  ;;  %2781 = vmatpush3.msra.mxu1 %v3275_v56 }
  0x17   :  { %2782 = vmatprep.subr.mxu1 %v3136_v2  ;;  %2788 = vmatprep.mubr.msk.f32.mxu1 %vm3137_vm0, %v3136_v2 }
  0x18   :  { %2783 = vmatpush3.msra.mxu1 %v3280_v57 }
  0x19   :  { %2784 = vmatprep.subr.mxu1 %v3136_v2 }
  0x1a   :  { %2785 = vmatpush3.msra.mxu1 %v3294_v59 }
  0x1b   :  { %2786 = vmatprep.subr.mxu1 %v3136_v2 }
  0x1c   :  { %2787 = vmatpush3.msra.mxu1 %v3311_v63 }
  0x1d   :  { %2802 = vmatprep.subr.mxu1 %v3136_v2 }
  0x7c   :  { %v3243_v33 = vpop.permute.xlu0 %300 }
  0xca   :  { %v288_v35 = vpop.f32.mrf.mxu1 }
  0xcb   :  { %v303_v36 = vadd.f32 %v3243_v33, %v288_v35 }
  0xcc   :  { %v2746_v37 = vpop.f32.mrf.mxu1 }
  0xcd   :  { %v311_v38 = vrot.slane %v303_v36, %v3227_v25 }
  0xce   :  { %v2735_v40 = vpop.f32.mrf.mxu0 }
  0xcf   :  { %v3249_v41 = vadd.f32 %v2735_v40, %v51_v39  ;;  %312 = vrot.lane.b32.xlu0 %v311_v38, %s3139_s0 }
  0xd0   :  { %v165_v42 = vpop.f32.mrf.mxu0 }
  0xd1   :  { %v3252_v43 = vadd.f32 %v165_v42, %v51_v39 }
  0xd3   :  { %v3256_v44 = vrot.slane %v3252_v43, %v3227_v25 }
  0xd4   :  { %v478_v13 = vpop.f32.mrf.mxu1 }
  0xd5   :  { %v292_v45 = vadd.f32 %v288_v35, %v3256_v44  ;;  %v191_v35 = vcombine.high %v3256_v44, %v3256_v44 }
  0xd6   :  { %v2768_v15 = vpop.f32.mrf.mxu1 }
  0xd7   :  { %v2570_v46 = vmul.f32 -1.442695, %v292_v45 }
  0xd9   :  { %3006 = vpow2.f32 %v2570_v46 }
  0xe6   :  { %v3007_v47 = vpop.eup %3006 }
  0xe7   :  { %v296_v48 = vadd.f32 1.0, %v3007_v47 }
  0xe9   :  { %3008 = vrcp.f32 %v296_v48 }
  0xf6   :  { %v3009_v49 = vpop.eup %3008 }
  0xf7   :  { %v322_v4 = vsub.f32 1.0, %v3009_v49  ;;  %v328_v8 = vmul.f32 0.0, %v3009_v49 }
 0x141   :  { %v313_v50 = vpop.permute.xlu0 %312 }
 0x142   :  { %v315_v51 = vmul.f32 %v3009_v49, %v313_v50 }
 0x144   :  { %317 = vrot.lane.b32.xlu1 %v315_v51, %s3139_s0 }
 0x1b6   :  { %v318_v52 = vpop.permute.xlu1 %317 }
 0x1b7   :  { %v320_v53 = vadd.f32 %v318_v52, %v3256_v44 }
 0x1b9   :  { %3010 = vtanh.f32 %v320_v53 }
 0x1c6   :  { %v3011_v62 = vpop.eup %3010 }
 0x1c7   :  { %324 = vrot.lane.b32.xlu1 %v3011_v62, %s3140_s29 }
 0x1cb   :  { %490 = vrot.lane.b32.xlu1 %v39_v1, %s3139_s0 }
 0x239   :  { %v325_v5 = vpop.permute.xlu1 %324 }
 0x23a   :  { %v327_v9 = vmul.f32 %v325_v5, %v322_v4 }
 0x23c   :  { %v3332_v10 = vadd.f32 %v328_v8, %v327_v9 }
 0x23d   :  { %v3337_v12 = vpop.permute.xlu1 %490 }
 0x23e   :  { %v337_v11 = vrot.slane %v3332_v10, %v3227_v25  ;;  %v493_v14 = vadd.f32 %v3337_v12, %v478_v13 }
 0x240   :  { %338 = vrot.lane.b32.xlu0 %v337_v11, %s3140_s29  ;;  %495 = vrot.lane.b32.xlu1 %v493_v14, %s3139_s0 }
 0x2b2   :  { %v339_v16 = vpop.permute.xlu0 %338  ;;  %v496_v21 = vpop.permute.xlu1 %495 }
 0x2b3   :  { %2756 = vmatmul.mubr.msk.f32.vlgmr.msra.gmra.mxu0 %vm218_vm2, %v339_v16 }
 0x2b4   :  { %2770 = vmatpush3.msra.mxu0 %v3165_v0  ;;  %2777 = vmatprep.mubr.msk.f32.mxu0 %vm3137_vm0, %v3136_v2 }
 0x2b5   :  { %2771 = vmatprep.subr.mxu0 %v3136_v2 }
 0x2b6   :  { %2772 = vmatpush3.msra.mxu0 %v3171_v3 }
 0x2b7   :  { %2773 = vmatprep.subr.mxu0 %v3136_v2 }
 0x2b8   :  { %2774 = vmatpush3.msra.mxu0 %v3185_v6 }
 0x2b9   :  { %2775 = vmatprep.subr.mxu0 %v3136_v2 }
 0x2ba   :  { %2776 = vmatpush3.msra.mxu0 %v3222_v22 }
 0x2bb   :  { %2778 = vmatmul.mubr.msk.f32.vlgmr.msra.gmra.mxu0 %vm218_vm2, %v339_v16  ;;  %2791 = vmatprep.subr.mxu0 %v3136_v2 }
 0x2bc   :  { %2792 = vmatpush3.msra.mxu0 %v3264_v54  ;;  %2799 = vmatprep.mubr.msk.f32.mxu0 %vm3137_vm0, %v3136_v2 }
 0x2bd   :  { %2793 = vmatprep.subr.mxu0 %v3136_v2 }
 0x2be   :  { %2794 = vmatpush3.msra.mxu0 %v3269_v55 }
 0x2bf   :  { %2795 = vmatprep.subr.mxu0 %v3136_v2 }
 0x2c0   :  { %2796 = vmatpush3.msra.mxu0 %v3286_v58 }
 0x2c1   :  { %2797 = vmatprep.subr.mxu0 %v3136_v2 }
 0x2c2   :  { %2798 = vmatpush3.msra.mxu0 %v3301_v61 }
 0x2c3   :  { %2813 = vmatprep.subr.mxu0 %v3136_v2 }
 0x373   :  { %v408_v19 = vpop.f32.mrf.mxu0 }
 0x374   :  { %v409_v20 = vadd.f32 %v408_v19, %v3365_v18 }
 0x375   :  { %v2757_v23 = vpop.f32.mrf.mxu0 }
 0x376   :  { %v482_v24 = vadd.f32 %v478_v13, %v409_v20 }
 0x378   :  { %v2572_v26 = vmul.f32 -1.442695, %v482_v24 }
 0x37a   :  { %3012 = vpow2.f32 %v2572_v26 }
 0x37b   :  { %v579_v27 = vpop.f32.mrf.mxu0 }
 0x37c   :  { %v590_v28 = vadd.f32 %v579_v27, %v3243_v33  ;;  %v583_v36 = vadd.f32 %v579_v27, %v191_v35 }
 0x37d   :  { %v2779_v29 = vpop.f32.mrf.mxu0 }
 0x37e   :  { %v598_v30 = vrot.slane %v590_v28, %v3227_v25  ;;  %v2574_v37 = vmul.f32 -1.442695, %v583_v36 }
 0x380   :  { %599 = vrot.lane.b32.xlu0 %v598_v30, %s3139_s0 }
 0x387   :  { %v3013_v31 = vpop.eup %3012 }
 0x388   :  { %v486_v7 = vadd.f32 1.0, %v3013_v31 }
 0x38a   :  { %3014 = vrcp.f32 %v486_v7 }
 0x38b   :  { %3016 = vpow2.f32 %v2574_v37 }
 0x397   :  { %v3015_v32 = vpop.eup %3014 }
 0x398   :  { %v498_v34 = vmul.f32 %v3015_v32, %v496_v21  ;;  %v3017_v38 = vpop.eup %3016  ;;  %v505_v51 = vsub.f32 1.0, %v3015_v32  ;;  %v511_v53 = vmul.f32 0.0, %v3015_v32 }
 0x399   :  { %v587_v39 = vadd.f32 1.0, %v3017_v38 }
 0x39a   :  { %500 = vrot.lane.b32.xlu1 %v498_v34, %s3139_s0  ;;  %v176_v34 = vcombine.high %v3252_v43, %v3252_v43 }
 0x39b   :  { %3018 = vrcp.f32 %v587_v39 }
 0x3a8   :  { %v3019_v40 = vpop.eup %3018 }
 0x3a9   :  { %v609_v1 = vsub.f32 1.0, %v3019_v40  ;;  %v615_v5 = vmul.f32 %v3019_v40, %v3332_v10 }
 0x3f2   :  { %v600_v42 = vpop.permute.xlu0 %599 }
 0x3f3   :  { %v602_v45 = vmul.f32 %v3019_v40, %v600_v42 }
 0x3f5   :  { %604 = vrot.lane.b32.xlu0 %v602_v45, %s3139_s0 }
 0x40c   :  { %v501_v46 = vpop.permute.xlu1 %500 }
 0x40d   :  { %v503_v47 = vadd.f32 %v501_v46, %v409_v20 }
 0x40f   :  { %3020 = vtanh.f32 %v503_v47 }
 0x41c   :  { %v3021_v48 = vpop.eup %3020 }
 0x41d   :  { %507 = vrot.lane.b32.xlu1 %v3021_v48, %s3140_s29 }
 0x467   :  { %v605_v49 = vpop.permute.xlu0 %604 }
 0x468   :  { %v607_v50 = vadd.f32 %v605_v49, %v191_v35  ;;  %v3434_v35 = vrot.slane %v176_v34, %v3227_v25 }
 0x46a   :  { %3022 = vtanh.f32 %v607_v50 }
 0x477   :  { %v3023_v44 = vpop.eup %3022 }
 0x478   :  { %611 = vrot.lane.b32.xlu0 %v3023_v44, %s3140_s29 }
 0x48f   :  { %v508_v52 = vpop.permute.xlu1 %507 }
 0x490   :  { %v510_v60 = vmul.f32 %v508_v52, %v505_v51 }
 0x492   :  { %v3377_v62 = vadd.f32 %v511_v53, %v510_v60 }
 0x494   :  { %700 = vrot.lane.b32.xlu1 %v3377_v62, %s3140_s29 }
 0x4ea   :  { %v612_v4 = vpop.permute.xlu0 %611 }
 0x4eb   :  { %v614_v8 = vmul.f32 %v612_v4, %v609_v1 }
 0x4ed   :  { %v3382_v9 = vadd.f32 %v615_v5, %v614_v8 }
 0x4ef   :  { %v624_v11 = vrot.slane %v3382_v9, %v3227_v25 }
 0x4f1   :  { %625 = vrot.lane.b32.xlu0 %v624_v11, %s3140_s29 }
 0x506   :  { %v701_v13 = vpop.permute.xlu1 %700 }
 0x507   :  { %2541 = vst.msk [vmem:[%s3814_s2] sm:$0x3] %vm2540_vm3, %v701_v13  ;;  %2800 = vmatmul.mubr.msk.f32.vlgmr.msra.gmra.mxu0 %vm218_vm2, %v701_v13 }
 0x508   :  { %2814 = vmatpush3.msra.mxu0 %v3275_v56  ;;  %2821 = vmatprep.mubr.msk.f32.mxu0 %vm3137_vm0, %v3136_v2 }
 0x509   :  { %2815 = vmatprep.subr.mxu0 %v3136_v2 }
 0x50a   :  { %2816 = vmatpush3.msra.mxu0 %v3280_v57 }
 0x50b   :  { %2817 = vmatprep.subr.mxu0 %v3136_v2 }
 0x50c   :  { %2818 = vmatpush3.msra.mxu0 %v3294_v59 }
 0x50d   :  { %2819 = vmatprep.subr.mxu0 %v3136_v2 }
 0x50e   :  { %2820 = vmatpush3.msra.mxu0 %v3311_v63 }
 0x50f   :  { %2835 = vmatprep.subr.mxu0 %v3136_v2 }
 0x563   :  { %v626_v10 = vpop.permute.xlu0 %625 }
 0x564   :  { %2789 = vmatmul.mubr.msk.f32.vlgmr.msra.gmra.mxu1 %vm218_vm2, %v626_v10 }
 0x565   :  { %2803 = vmatpush3.msra.mxu1 %v3165_v0  ;;  %2810 = vmatprep.mubr.msk.f32.mxu1 %vm3137_vm0, %v3136_v2 }
 0x566   :  { %2804 = vmatprep.subr.mxu1 %v3136_v2 }
 0x567   :  { %2805 = vmatpush3.msra.mxu1 %v3171_v3 }
 0x568   :  { %2806 = vmatprep.subr.mxu1 %v3136_v2 }
 0x569   :  { %2807 = vmatpush3.msra.mxu1 %v3185_v6 }
 0x56a   :  { %2808 = vmatprep.subr.mxu1 %v3136_v2 }
 0x56b   :  { %2809 = vmatpush3.msra.mxu1 %v3222_v22 }
 0x56c   :  { %2811 = vmatmul.mubr.msk.f32.vlgmr.msra.gmra.mxu1 %vm218_vm2, %v626_v10  ;;  %2824 = vmatprep.subr.mxu1 %v3136_v2 }
 0x56d   :  { %2825 = vmatpush3.msra.mxu1 %v3264_v54  ;;  %2832 = vmatprep.mubr.msk.f32.mxu1 %vm3137_vm0, %v3136_v2 }
 0x56e   :  { %2826 = vmatprep.subr.mxu1 %v3136_v2 }
 0x56f   :  { %2827 = vmatpush3.msra.mxu1 %v3269_v55 }
 0x570   :  { %2828 = vmatprep.subr.mxu1 %v3136_v2 }
 0x571   :  { %2829 = vmatpush3.msra.mxu1 %v3286_v58 }
 0x572   :  { %2830 = vmatprep.subr.mxu1 %v3136_v2 }
 0x573   :  { %2831 = vmatpush3.msra.mxu1 %v3301_v61 }
 0x574   :  { %2846 = vmatprep.subr.mxu1 %v3136_v2 }
 0x5c7   :  { %v770_v14 = vpop.f32.mrf.mxu0 }
 0x5c8   :  { %v781_v15 = vadd.f32 %v770_v14, %v3337_v12 }
 0x5c9   :  { %v2801_v16 = vpop.f32.mrf.mxu0 }
 0x5ca   :  { %783 = vrot.lane.b32.xlu1 %v781_v15, %s3139_s0 }
 0x624   :  { %v695_v17 = vpop.f32.mrf.mxu1 }
 0x625   :  { %v696_v19 = vadd.f32 %v695_v17, %v3365_v18 }
 0x626   :  { %v2790_v20 = vpop.f32.mrf.mxu1 }
 0x627   :  { %v774_v23 = vadd.f32 %v770_v14, %v696_v19 }
 0x629   :  { %v2577_v24 = vmul.f32 -1.442695, %v774_v23 }
 0x62b   :  { %3024 = vpow2.f32 %v2577_v24 }
 0x62c   :  { %v867_v26 = vpop.f32.mrf.mxu1 }
 0x62d   :  { %v878_v27 = vadd.f32 %v867_v26, %v3243_v33  ;;  %v871_v36 = vadd.f32 %v867_v26, %v3434_v35 }
 0x62e   :  { %v2812_v28 = vpop.f32.mrf.mxu1 }
 0x62f   :  { %v886_v29 = vrot.slane %v878_v27, %v3227_v25  ;;  %v2579_v37 = vmul.f32 -1.442695, %v871_v36 }
 0x631   :  { %887 = vrot.lane.b32.xlu0 %v886_v29, %s3139_s0 }
 0x638   :  { %v3025_v30 = vpop.eup %3024 }
 0x639   :  { %v778_v31 = vadd.f32 1.0, %v3025_v30 }
 0x63b   :  { %3026 = vrcp.f32 %v778_v31 }
 0x63c   :  { %v784_v21 = vpop.permute.xlu1 %783  ;;  %3028 = vpow2.f32 %v2579_v37 }
 0x648   :  { %v3027_v7 = vpop.eup %3026 }
 0x649   :  { %v786_v32 = vmul.f32 %v3027_v7, %v784_v21  ;;  %v3029_v38 = vpop.eup %3028  ;;  %v793_v44 = vsub.f32 1.0, %v3027_v7  ;;  %v799_v52 = vmul.f32 %v3027_v7, %v3377_v62 }
 0x64a   :  { %v875_v39 = vadd.f32 1.0, %v3029_v38 }
 0x64b   :  { %788 = vrot.lane.b32.xlu1 %v786_v32, %s3139_s0  ;;  %v192_v32 = vcombine.high %v3434_v35, %v3434_v35 }
 0x64c   :  { %3030 = vrcp.f32 %v875_v39 }
 0x659   :  { %v3031_v40 = vpop.eup %3030 }
 0x65a   :  { %v897_v1 = vsub.f32 1.0, %v3031_v40  ;;  %v903_v5 = vmul.f32 %v3031_v40, %v3382_v9 }
 0x6a3   :  { %v888_v42 = vpop.permute.xlu0 %887 }
 0x6a4   :  { %v890_v45 = vmul.f32 %v3031_v40, %v888_v42 }
 0x6a6   :  { %892 = vrot.lane.b32.xlu0 %v890_v45, %s3139_s0 }
 0x6bd   :  { %v789_v46 = vpop.permute.xlu1 %788 }
 0x6be   :  { %v791_v47 = vadd.f32 %v789_v46, %v696_v19 }
 0x6c0   :  { %3032 = vtanh.f32 %v791_v47 }
 0x6cd   :  { %v3033_v48 = vpop.eup %3032 }
 0x6ce   :  { %795 = vrot.lane.b32.xlu1 %v3033_v48, %s3140_s29 }
 0x718   :  { %v893_v43 = vpop.permute.xlu0 %892 }
 0x719   :  { %v895_v49 = vadd.f32 %v893_v43, %v3434_v35 }
 0x71b   :  { %3034 = vtanh.f32 %v895_v49 }
 0x728   :  { %v3035_v50 = vpop.eup %3034 }
 0x729   :  { %899 = vrot.lane.b32.xlu0 %v3035_v50, %s3140_s29 }
 0x740   :  { %v796_v51 = vpop.permute.xlu1 %795 }
 0x741   :  { %v798_v53 = vmul.f32 %v796_v51, %v793_v44 }
 0x743   :  { %v3442_v60 = vadd.f32 %v799_v52, %v798_v53 }
 0x745   :  { %988 = vrot.lane.b32.xlu1 %v3442_v60, %s3140_s29 }
 0x79b   :  { %v900_v4 = vpop.permute.xlu0 %899 }
 0x79c   :  { %v902_v8 = vmul.f32 %v900_v4, %v897_v1 }
 0x79e   :  { %v3447_v11 = vadd.f32 %v903_v5, %v902_v8 }
 0x7a0   :  { %v912_v13 = vrot.slane %v3447_v11, %v3227_v25 }
 0x7a2   :  { %913 = vrot.lane.b32.xlu0 %v912_v13, %s3140_s29 }
 0x7b7   :  { %v989_v10 = vpop.permute.xlu1 %988 }
 0x7b8   :  { %2542 = vst.msk [vmem:[%s3814_s2 + $0x2] sm:$0x3] %vm2540_vm3, %v989_v10  ;;  %2833 = vmatmul.mubr.msk.f32.vlgmr.msra.gmra.mxu1 %vm218_vm2, %v989_v10 }
 0x7b9   :  { %2847 = vmatpush3.msra.mxu1 %v3275_v56  ;;  %2854 = vmatprep.mubr.msk.f32.mxu1 %vm3137_vm0, %v3136_v2 }
 0x7ba   :  { %2848 = vmatprep.subr.mxu1 %v3136_v2 }
 0x7bb   :  { %2849 = vmatpush3.msra.mxu1 %v3280_v57 }
 0x7bc   :  { %2850 = vmatprep.subr.mxu1 %v3136_v2 }
 0x7bd   :  { %2851 = vmatpush3.msra.mxu1 %v3294_v59 }
 0x7be   :  { %2852 = vmatprep.subr.mxu1 %v3136_v2 }
 0x7bf   :  { %2853 = vmatpush3.msra.mxu1 %v3311_v63 }
 0x7c0   :  { %2868 = vmatprep.subr.mxu1 %v3136_v2 }
 0x814   :  { %v914_v62 = vpop.permute.xlu0 %913 }
 0x815   :  { %2822 = vmatmul.mubr.msk.f32.vlgmr.msra.gmra.mxu0 %vm218_vm2, %v914_v62 }
 0x816   :  { %2836 = vmatpush3.msra.mxu0 %v3165_v0  ;;  %2843 = vmatprep.mubr.msk.f32.mxu0 %vm3137_vm0, %v3136_v2 }
 0x817   :  { %2837 = vmatprep.subr.mxu0 %v3136_v2 }
 0x818   :  { %2838 = vmatpush3.msra.mxu0 %v3171_v3 }
 0x819   :  { %2839 = vmatprep.subr.mxu0 %v3136_v2 }
 0x81a   :  { %2840 = vmatpush3.msra.mxu0 %v3185_v6 }
 0x81b   :  { %2841 = vmatprep.subr.mxu0 %v3136_v2 }
 0x81c   :  { %2842 = vmatpush3.msra.mxu0 %v3222_v22 }
 0x81d   :  { %2844 = vmatmul.mubr.msk.f32.vlgmr.msra.gmra.mxu0 %vm218_vm2, %v914_v62  ;;  %2857 = vmatprep.subr.mxu0 %v3136_v2 }
 0x81e   :  { %2858 = vmatpush3.msra.mxu0 %v3264_v54  ;;  %2865 = vmatprep.mubr.msk.f32.mxu0 %vm3137_vm0, %v3136_v2 }
 0x81f   :  { %2859 = vmatprep.subr.mxu0 %v3136_v2 }
 0x820   :  { %2860 = vmatpush3.msra.mxu0 %v3269_v55 }
 0x821   :  { %2861 = vmatprep.subr.mxu0 %v3136_v2 }
 0x822   :  { %2862 = vmatpush3.msra.mxu0 %v3286_v58 }
 0x823   :  { %2863 = vmatprep.subr.mxu0 %v3136_v2 }
 0x824   :  { %2864 = vmatpush3.msra.mxu0 %v3301_v61 }
 0x825   :  { %2879 = vmatprep.subr.mxu0 %v3136_v2 }
 0x878   :  { %v1058_v9 = vpop.f32.mrf.mxu1 }
 0x879   :  { %v1069_v14 = vadd.f32 %v1058_v9, %v3337_v12 }
 0x87a   :  { %v2834_v15 = vpop.f32.mrf.mxu1 }
 0x87b   :  { %1071 = vrot.lane.b32.xlu1 %v1069_v14, %s3139_s0 }
 0x8d5   :  { %v983_v16 = vpop.f32.mrf.mxu0 }
 0x8d6   :  { %v984_v17 = vadd.f32 %v983_v16, %v3365_v18 }
 0x8d7   :  { %v2823_v19 = vpop.f32.mrf.mxu0 }
 0x8d8   :  { %v1062_v20 = vadd.f32 %v1058_v9, %v984_v17 }
 0x8da   :  { %v2582_v23 = vmul.f32 -1.442695, %v1062_v20 }
 0x8dc   :  { %3036 = vpow2.f32 %v2582_v23 }
 0x8dd   :  { %v1155_v24 = vpop.f32.mrf.mxu0 }
 0x8de   :  { %v1166_v26 = vadd.f32 %v1155_v24, %v3243_v33  ;;  %v1159_v34 = vadd.f32 %v1155_v24, %v192_v32 }
 0x8df   :  { %v2845_v27 = vpop.f32.mrf.mxu0 }
 0x8e0   :  { %v1174_v28 = vrot.slane %v1166_v26, %v3227_v25  ;;  %v2584_v36 = vmul.f32 -1.442695, %v1159_v34 }
 0x8e2   :  { %1175 = vrot.lane.b32.xlu0 %v1174_v28, %s3139_s0 }
 0x8e9   :  { %v3037_v29 = vpop.eup %3036 }
 0x8ea   :  { %v1066_v30 = vadd.f32 1.0, %v3037_v29 }
 0x8ec   :  { %3038 = vrcp.f32 %v1066_v30 }
 0x8ed   :  { %v1072_v7 = vpop.permute.xlu1 %1071  ;;  %3040 = vpow2.f32 %v2584_v36 }
 0x8f9   :  { %v3039_v31 = vpop.eup %3038 }
 0x8fa   :  { %v1074_v21 = vmul.f32 %v3039_v31, %v1072_v7  ;;  %v3041_v37 = vpop.eup %3040  ;;  %v1081_v49 = vsub.f32 1.0, %v3039_v31  ;;  %v1087_v44 = vmul.f32 %v3039_v31, %v3442_v60  ;;  %v3558_v7 = vrot.slane %v3249_v41, %v3227_v25 }
 0x8fb   :  { %v1163_v38 = vadd.f32 1.0, %v3041_v37 }
 0x8fc   :  { %1076 = vrot.lane.b32.xlu1 %v1074_v21, %s3139_s0 }
 0x8fd   :  { %3042 = vrcp.f32 %v1163_v38 }
 0x90a   :  { %v3043_v39 = vpop.eup %3042 }
 0x90b   :  { %v1185_v53 = vsub.f32 1.0, %v3043_v39  ;;  %v1191_v4 = vmul.f32 %v3043_v39, %v3447_v11 }
 0x954   :  { %v1176_v40 = vpop.permute.xlu0 %1175 }
 0x955   :  { %v1178_v42 = vmul.f32 %v3043_v39, %v1176_v40 }
 0x957   :  { %1180 = vrot.lane.b32.xlu0 %v1178_v42, %s3139_s0 }
 0x96e   :  { %v1077_v45 = vpop.permute.xlu1 %1076 }
 0x96f   :  { %v1079_v46 = vadd.f32 %v1077_v45, %v984_v17 }
 0x971   :  { %3044 = vtanh.f32 %v1079_v46 }
 0x97e   :  { %v3045_v47 = vpop.eup %3044 }
 0x97f   :  { %1083 = vrot.lane.b32.xlu1 %v3045_v47, %s3140_s29 }
 0x9c9   :  { %v1181_v48 = vpop.permute.xlu0 %1180 }
 0x9ca   :  { %v1183_v43 = vadd.f32 %v1181_v48, %v192_v32 }
 0x9cc   :  { %3046 = vtanh.f32 %v1183_v43 }
 0x9d9   :  { %v3047_v35 = vpop.eup %3046 }
 0x9da   :  { %1187 = vrot.lane.b32.xlu0 %v3047_v35, %s3140_s29 }
 0x9f1   :  { %v1084_v50 = vpop.permute.xlu1 %1083 }
 0x9f2   :  { %v1086_v51 = vmul.f32 %v1084_v50, %v1081_v49 }
 0x9f4   :  { %v3502_v52 = vadd.f32 %v1087_v44, %v1086_v51 }
 0x9f6   :  { %1276 = vrot.lane.b32.xlu1 %v3502_v52, %s3140_s29 }
 0xa4c   :  { %v1188_v1 = vpop.permute.xlu0 %1187 }
 0xa4d   :  { %v1190_v5 = vmul.f32 %v1188_v1, %v1185_v53 }
 0xa4f   :  { %v3507_v8 = vadd.f32 %v1191_v4, %v1190_v5 }
 0xa51   :  { %v1200_v13 = vrot.slane %v3507_v8, %v3227_v25 }
 0xa53   :  { %1201 = vrot.lane.b32.xlu0 %v1200_v13, %s3140_s29 }
 0xa68   :  { %v1277_v10 = vpop.permute.xlu1 %1276 }
 0xa69   :  { %2543 = vst.msk [vmem:[%s3814_s2 + $0x4] sm:$0x3] %vm2540_vm3, %v1277_v10  ;;  %2866 = vmatmul.mubr.msk.f32.vlgmr.msra.gmra.mxu0 %vm218_vm2, %v1277_v10 }
 0xa6a   :  { %2880 = vmatpush3.msra.mxu0 %v3275_v56  ;;  %2887 = vmatprep.mubr.msk.f32.mxu0 %vm3137_vm0, %v3136_v2 }
 0xa6b   :  { %2881 = vmatprep.subr.mxu0 %v3136_v2 }
 0xa6c   :  { %2882 = vmatpush3.msra.mxu0 %v3280_v57 }
 0xa6d   :  { %2883 = vmatprep.subr.mxu0 %v3136_v2 }
 0xa6e   :  { %2884 = vmatpush3.msra.mxu0 %v3294_v59 }
 0xa6f   :  { %2885 = vmatprep.subr.mxu0 %v3136_v2 }
 0xa70   :  { %2886 = vmatpush3.msra.mxu0 %v3311_v63 }
 0xa71   :  { %2901 = vmatprep.subr.mxu0 %v3136_v2 }
 0xac5   :  { %v1202_v60 = vpop.permute.xlu0 %1201 }
 0xac6   :  { %2855 = vmatmul.mubr.msk.f32.vlgmr.msra.gmra.mxu1 %vm218_vm2, %v1202_v60 }
 0xac7   :  { %2869 = vmatpush3.msra.mxu1 %v3165_v0  ;;  %2876 = vmatprep.mubr.msk.f32.mxu1 %vm3137_vm0, %v3136_v2 }
 0xac8   :  { %2870 = vmatprep.subr.mxu1 %v3136_v2 }
 0xac9   :  { %2871 = vmatpush3.msra.mxu1 %v3171_v3 }
 0xaca   :  { %2872 = vmatprep.subr.mxu1 %v3136_v2 }
 0xacb   :  { %2873 = vmatpush3.msra.mxu1 %v3185_v6 }
 0xacc   :  { %2874 = vmatprep.subr.mxu1 %v3136_v2 }
 0xacd   :  { %2875 = vmatpush3.msra.mxu1 %v3222_v22 }
 0xace   :  { %2877 = vmatmul.mubr.msk.f32.vlgmr.msra.gmra.mxu1 %vm218_vm2, %v1202_v60  ;;  %2890 = vmatprep.subr.mxu1 %v3136_v2 }
 0xacf   :  { %2891 = vmatpush3.msra.mxu1 %v3264_v54  ;;  %2898 = vmatprep.mubr.msk.f32.mxu1 %vm3137_vm0, %v3136_v2 }
 0xad0   :  { %2892 = vmatprep.subr.mxu1 %v3136_v2 }
 0xad1   :  { %2893 = vmatpush3.msra.mxu1 %v3269_v55 }
 0xad2   :  { %2894 = vmatprep.subr.mxu1 %v3136_v2 }
 0xad3   :  { %2895 = vmatpush3.msra.mxu1 %v3286_v58 }
 0xad4   :  { %2896 = vmatprep.subr.mxu1 %v3136_v2 }
 0xad5   :  { %2897 = vmatpush3.msra.mxu1 %v3301_v61 }
 0xad6   :  { %2912 = vmatprep.subr.mxu1 %v3136_v2 }
 0xb29   :  { %v1346_v11 = vpop.f32.mrf.mxu0 }
 0xb2a   :  { %v1357_v62 = vadd.f32 %v1346_v11, %v3337_v12 }
 0xb2b   :  { %v2867_v9 = vpop.f32.mrf.mxu0 }
 0xb2c   :  { %1359 = vrot.lane.b32.xlu1 %v1357_v62, %s3139_s0 }
 0xb86   :  { %v1271_v14 = vpop.f32.mrf.mxu1 }
 0xb87   :  { %v1272_v15 = vadd.f32 %v1271_v14, %v3365_v18 }
 0xb88   :  { %v2856_v16 = vpop.f32.mrf.mxu1 }
 0xb89   :  { %v1350_v17 = vadd.f32 %v1346_v11, %v1272_v15 }
 0xb8b   :  { %v2587_v19 = vmul.f32 -1.442695, %v1350_v17 }
 0xb8d   :  { %3048 = vpow2.f32 %v2587_v19 }
 0xb8e   :  { %v1443_v20 = vpop.f32.mrf.mxu1 }
 0xb8f   :  { %v1454_v23 = vadd.f32 %v1443_v20, %v3243_v33  ;;  %v1447_v21 = vadd.f32 %v1443_v20, %v3558_v7 }
 0xb90   :  { %v2878_v24 = vpop.f32.mrf.mxu1 }
 0xb91   :  { %v1462_v26 = vrot.slane %v1454_v23, %v3227_v25  ;;  %v2589_v32 = vmul.f32 -1.442695, %v1447_v21  ;;  %v208_v24 = vcombine.high %v3558_v7, %v3558_v7 }
 0xb93   :  { %1463 = vrot.lane.b32.xlu0 %v1462_v26, %s3139_s0 }
 0xb9a   :  { %v3049_v27 = vpop.eup %3048 }
 0xb9b   :  { %v1354_v28 = vadd.f32 1.0, %v3049_v27 }
 0xb9d   :  { %3050 = vrcp.f32 %v1354_v28 }
 0xb9e   :  { %v1360_v30 = vpop.permute.xlu1 %1359  ;;  %3052 = vpow2.f32 %v2589_v32 }
 0xbaa   :  { %v3051_v29 = vpop.eup %3050 }
 0xbab   :  { %v1362_v31 = vmul.f32 %v3051_v29, %v1360_v30  ;;  %v3053_v34 = vpop.eup %3052  ;;  %v1369_v43 = vsub.f32 1.0, %v3051_v29  ;;  %v1375_v49 = vmul.f32 %v3051_v29, %v3502_v52 }
 0xbac   :  { %v1451_v36 = vadd.f32 1.0, %v3053_v34 }
 0xbad   :  { %1364 = vrot.lane.b32.xlu1 %v1362_v31, %s3139_s0 }
 0xbae   :  { %3054 = vrcp.f32 %v1451_v36 }
 0xbbb   :  { %v3055_v37 = vpop.eup %3054 }
 0xbbc   :  { %v1473_v51 = vsub.f32 1.0, %v3055_v37  ;;  %v1479_v1 = vmul.f32 %v3055_v37, %v3507_v8 }
 0xc05   :  { %v1464_v38 = vpop.permute.xlu0 %1463 }
 0xc06   :  { %v1466_v39 = vmul.f32 %v3055_v37, %v1464_v38 }
 0xc08   :  { %1468 = vrot.lane.b32.xlu0 %v1466_v39, %s3139_s0 }
 0xc1f   :  { %v1365_v40 = vpop.permute.xlu1 %1364 }
 0xc20   :  { %v1367_v42 = vadd.f32 %v1365_v40, %v1272_v15 }
 0xc22   :  { %3056 = vtanh.f32 %v1367_v42 }
 0xc2f   :  { %v3057_v45 = vpop.eup %3056 }
 0xc30   :  { %1371 = vrot.lane.b32.xlu1 %v3057_v45, %s3140_s29 }
 0xc7a   :  { %v1469_v46 = vpop.permute.xlu0 %1468 }
 0xc7b   :  { %v1471_v47 = vadd.f32 %v1469_v46, %v3558_v7 }
 0xc7d   :  { %3058 = vtanh.f32 %v1471_v47 }
 0xc8a   :  { %v3059_v48 = vpop.eup %3058 }
 0xc8b   :  { %1475 = vrot.lane.b32.xlu0 %v3059_v48, %s3140_s29 }
 0xca2   :  { %v1372_v35 = vpop.permute.xlu1 %1371 }
 0xca3   :  { %v1374_v50 = vmul.f32 %v1372_v35, %v1369_v43 }
 0xca5   :  { %v3566_v44 = vadd.f32 %v1375_v49, %v1374_v50 }
 0xca7   :  { %1564 = vrot.lane.b32.xlu1 %v3566_v44, %s3140_s29 }
 0xcfd   :  { %v1476_v53 = vpop.permute.xlu0 %1475 }
 0xcfe   :  { %v1478_v4 = vmul.f32 %v1476_v53, %v1473_v51  ;;  %v3690_v53 = vld [vmem:[%s3813_s1 + $0x58] sm:$0xff] }
 0xd00   :  { %v3571_v5 = vadd.f32 %v1479_v1, %v1478_v4 }
 0xd02   :  { %v1488_v13 = vrot.slane %v3571_v5, %v3227_v25 }
 0xd04   :  { %1489 = vrot.lane.b32.xlu0 %v1488_v13, %s3140_s29 }
 0xd19   :  { %v1565_v10 = vpop.permute.xlu1 %1564 }
 0xd1a   :  { %2544 = vst.msk [vmem:[%s3814_s2 + $0x6] sm:$0x3] %vm2540_vm3, %v1565_v10  ;;  %2899 = vmatmul.mubr.msk.f32.vlgmr.msra.gmra.mxu1 %vm218_vm2, %v1565_v10 }
 0xd1b   :  { %2913 = vmatpush3.msra.mxu1 %v3275_v56  ;;  %2920 = vmatprep.mubr.msk.f32.mxu1 %vm3137_vm0, %v3136_v2 }
 0xd1c   :  { %2914 = vmatprep.subr.mxu1 %v3136_v2 }
 0xd1d   :  { %2915 = vmatpush3.msra.mxu1 %v3280_v57 }
 0xd1e   :  { %2916 = vmatprep.subr.mxu1 %v3136_v2 }
 0xd1f   :  { %2917 = vmatpush3.msra.mxu1 %v3294_v59 }
 0xd20   :  { %2918 = vmatprep.subr.mxu1 %v3136_v2 }
 0xd21   :  { %2919 = vmatpush3.msra.mxu1 %v3311_v63 }
 0xd22   :  { %2934 = vmatprep.subr.mxu1 %v3136_v2 }
 0xd76   :  { %v1490_v52 = vpop.permute.xlu0 %1489 }
 0xd77   :  { %2888 = vmatmul.mubr.msk.f32.vlgmr.msra.gmra.mxu0 %vm218_vm2, %v1490_v52 }
 0xd78   :  { %2902 = vmatpush3.msra.mxu0 %v3165_v0  ;;  %2909 = vmatprep.mubr.msk.f32.mxu0 %vm3137_vm0, %v3136_v2 }
 0xd79   :  { %2903 = vmatprep.subr.mxu0 %v3136_v2 }
 0xd7a   :  { %2904 = vmatpush3.msra.mxu0 %v3171_v3 }
 0xd7b   :  { %2905 = vmatprep.subr.mxu0 %v3136_v2 }
 0xd7c   :  { %2906 = vmatpush3.msra.mxu0 %v3185_v6 }
 0xd7d   :  { %2907 = vmatprep.subr.mxu0 %v3136_v2 }
 0xd7e   :  { %2908 = vmatpush3.msra.mxu0 %v3222_v22 }
 0xd7f   :  { %2910 = vmatmul.mubr.msk.f32.vlgmr.msra.gmra.mxu0 %vm218_vm2, %v1490_v52  ;;  %2923 = vmatprep.subr.mxu0 %v3136_v2 }
 0xd80   :  { %2924 = vmatpush3.msra.mxu0 %v3264_v54  ;;  %2931 = vmatprep.mubr.msk.f32.mxu0 %vm3137_vm0, %v3136_v2 }
 0xd81   :  { %2925 = vmatprep.subr.mxu0 %v3136_v2 }
 0xd82   :  { %2926 = vmatpush3.msra.mxu0 %v3269_v55 }
 0xd83   :  { %2927 = vmatprep.subr.mxu0 %v3136_v2 }
 0xd84   :  { %2928 = vmatpush3.msra.mxu0 %v3286_v58 }
 0xd85   :  { %2929 = vmatprep.subr.mxu0 %v3136_v2 }
 0xd86   :  { %2930 = vmatpush3.msra.mxu0 %v3301_v61 }
 0xd87   :  { %2945 = vmatprep.subr.mxu0 %v3136_v2 }
 0xdda   :  { %v1634_v0 = vpop.f32.mrf.mxu1 }
 0xddb   :  { %v1645_v3 = vadd.f32 %v1634_v0, %v3337_v12 }
 0xddc   :  { %v2900_v6 = vpop.f32.mrf.mxu1 }
 0xddd   :  { %1647 = vrot.lane.b32.xlu0 %v1645_v3, %s3139_s0 }
 0xe37   :  { %v1559_v22 = vpop.f32.mrf.mxu0 }
 0xe38   :  { %v1560_v8 = vadd.f32 %v1559_v22, %v3365_v18 }
 0xe39   :  { %v2889_v55 = vpop.f32.mrf.mxu0 }
 0xe3a   :  { %v1638_v60 = vadd.f32 %v1634_v0, %v1560_v8 }
 0xe3c   :  { %v2592_v11 = vmul.f32 -1.442695, %v1638_v60 }
 0xe3e   :  { %3060 = vpow2.f32 %v2592_v11 }
 0xe3f   :  { %v1731_v62 = vpop.f32.mrf.mxu0 }
 0xe40   :  { %v1742_v9 = vadd.f32 %v1731_v62, %v3243_v33  ;;  %v1735_v26 = vadd.f32 %v1731_v62, %v208_v24  ;;  %v193_v62 = vcombine.high %v3249_v41, %v3249_v41 }
 0xe41   :  { %v2911_v14 = vpop.f32.mrf.mxu0 }
 0xe42   :  { %v1750_v15 = vrot.slane %v1742_v9, %v3227_v25  ;;  %v2594_v27 = vmul.f32 -1.442695, %v1735_v26  ;;  %v3708_v9 = vrot.slane %v193_v62, %v3227_v25 }
 0xe44   :  { %1751 = vrot.lane.b32.xlu1 %v1750_v15, %s3139_s0 }
 0xe4b   :  { %v3061_v16 = vpop.eup %3060 }
 0xe4c   :  { %v1642_v17 = vadd.f32 1.0, %v3061_v16 }
 0xe4e   :  { %3062 = vrcp.f32 %v1642_v17 }
 0xe4f   :  { %v1648_v20 = vpop.permute.xlu0 %1647  ;;  %3064 = vpow2.f32 %v2594_v27 }
 0xe5b   :  { %v3063_v19 = vpop.eup %3062 }
 0xe5c   :  { %v1650_v23 = vmul.f32 %v3063_v19, %v1648_v20  ;;  %v3065_v28 = vpop.eup %3064  ;;  %v1657_v39 = vsub.f32 1.0, %v3063_v19  ;;  %v1663_v42 = vmul.f32 %v3063_v19, %v3566_v44 }
 0xe5d   :  { %v1739_v29 = vadd.f32 1.0, %v3065_v28 }
 0xe5e   :  { %1652 = vrot.lane.b32.xlu0 %v1650_v23, %s3139_s0 }
 0xe5f   :  { %3066 = vrcp.f32 %v1739_v29 }
 0xe6c   :  { %v3067_v30 = vpop.eup %3066 }
 0xe6d   :  { %v1761_v47 = vsub.f32 1.0, %v3067_v30  ;;  %v1767_v43 = vmul.f32 %v3067_v30, %v3571_v5 }
 0xeb6   :  { %v1752_v31 = vpop.permute.xlu1 %1751 }
 0xeb7   :  { %v1754_v21 = vmul.f32 %v3067_v30, %v1752_v31 }
 0xeb9   :  { %1756 = vrot.lane.b32.xlu1 %v1754_v21, %s3139_s0 }
 0xed0   :  { %v1653_v32 = vpop.permute.xlu0 %1652 }
 0xed1   :  { %v1655_v34 = vadd.f32 %v1653_v32, %v1560_v8 }
 0xed3   :  { %3068 = vtanh.f32 %v1655_v34 }
 0xee0   :  { %v3069_v36 = vpop.eup %3068 }
 0xee1   :  { %1659 = vrot.lane.b32.xlu0 %v3069_v36, %s3140_s29 }
 0xf2b   :  { %v1757_v37 = vpop.permute.xlu1 %1756 }
 0xf2c   :  { %v1759_v38 = vadd.f32 %v1757_v37, %v208_v24 }
 0xf2e   :  { %3070 = vtanh.f32 %v1759_v38 }
 0xf3b   :  { %v3071_v7 = vpop.eup %3070 }
 0xf3c   :  { %1763 = vrot.lane.b32.xlu1 %v3071_v7, %s3140_s29 }
 0xf53   :  { %v1660_v40 = vpop.permute.xlu0 %1659 }
 0xf54   :  { %v1662_v45 = vmul.f32 %v1660_v40, %v1657_v39 }
 0xf56   :  { %v3626_v46 = vadd.f32 %v1663_v42, %v1662_v45  ;;  %v3107_v45 = vld [vmem:[%s3813_s1 + $0x40] sm:$0xff] }
 0xf58   :  { %1852 = vrot.lane.b32.xlu0 %v3626_v46, %s3140_s29 }
 0xfae   :  { %v1764_v48 = vpop.permute.xlu1 %1763 }
 0xfaf   :  { %v1766_v35 = vmul.f32 %v1764_v48, %v1761_v47  ;;  %v3109_v47 = vld [vmem:[%s3813_s1 + $0x30] sm:$0xff]  ;;  %v3110_v48 = vld [vmem:[%s3813_s1 + $0x28] sm:$0xff] }
 0xfb1   :  { %v3631_v49 = vadd.f32 %v1767_v43, %v1766_v35  ;;  %v3111_v35 = vld [vmem:[%s3813_s1 + $0x60] sm:$0xff] }
 0xfb3   :  { %v1776_v50 = vrot.slane %v3631_v49, %v3227_v25 }
 0xfb5   :  { %1777 = vrot.lane.b32.xlu1 %v1776_v50, %s3140_s29  ;;  %v3113_v50 = vld [vmem:[%s3813_s1 + $0x48] sm:$0xff] }
 0xfca   :  { %v1853_v51 = vpop.permute.xlu0 %1852 }
 0xfcb   :  { %2545 = vst.msk [vmem:[%s3814_s2 + $0x8] sm:$0x3] %vm2540_vm3, %v1853_v51  ;;  %2932 = vmatmul.mubr.msk.f32.vlgmr.msra.gmra.mxu0 %vm218_vm2, %v1853_v51 }
 0xfcc   :  { %2946 = vmatpush3.msra.mxu0 %v3275_v56  ;;  %2953 = vmatprep.mubr.msk.f32.mxu0 %vm3137_vm0, %v3136_v2  ;;  %v3655_v56 = vld [vmem:[%s3813_s1 + $0x20] sm:$0xff] }
 0xfcd   :  { %2947 = vmatprep.subr.mxu0 %v3136_v2 }
 0xfce   :  { %2948 = vmatpush3.msra.mxu0 %v3280_v57  ;;  %v3664_v57 = vld [vmem:[%s3813_s1 + $0x18] sm:$0xff] }
 0xfcf   :  { %2949 = vmatprep.subr.mxu0 %v3136_v2 }
 0xfd0   :  { %2950 = vmatpush3.msra.mxu0 %v3294_v59  ;;  %v3671_v59 = vld [vmem:[%s3813_s1 + $0x10] sm:$0xff] }
 0xfd1   :  { %2951 = vmatprep.subr.mxu0 %v3136_v2 }
 0xfd2   :  { %2952 = vmatpush3.msra.mxu0 %v3311_v63  ;;  %v3678_v63 = vld [vmem:[%s3813_s1 + $0x8] sm:$0xff] }
 0xfd3   :  { %2967 = vmatprep.subr.mxu0 %v3136_v2 }
0x1027   :  { %v1778_v44 = vpop.permute.xlu1 %1777 }
0x1028   :  { %2921 = vmatmul.mubr.msk.f32.vlgmr.msra.gmra.mxu1 %vm218_vm2, %v1778_v44 }
0x1029   :  { %2935 = vmatpush3.msra.mxu1 %v3655_v56  ;;  %2942 = vmatprep.mubr.msk.f32.mxu1 %vm3137_vm0, %v3136_v2 }
0x102a   :  { %2936 = vmatprep.subr.mxu1 %v3136_v2 }
0x102b   :  { %2937 = vmatpush3.msra.mxu1 %v3664_v57 }
0x102c   :  { %2938 = vmatprep.subr.mxu1 %v3136_v2 }
0x102d   :  { %2939 = vmatpush3.msra.mxu1 %v3671_v59 }
0x102e   :  { %2940 = vmatprep.subr.mxu1 %v3136_v2 }
0x102f   :  { %2941 = vmatpush3.msra.mxu1 %v3678_v63 }
0x1030   :  { %2943 = vmatmul.mubr.msk.f32.vlgmr.msra.gmra.mxu1 %vm218_vm2, %v1778_v44  ;;  %2956 = vmatprep.subr.mxu1 %v3136_v2 }
0x1031   :  { %2957 = vmatpush3.msra.mxu1 %v3264_v54  ;;  %2964 = vmatprep.mubr.msk.f32.mxu1 %vm3137_vm0, %v3136_v2 }
0x1032   :  { %2958 = vmatprep.subr.mxu1 %v3136_v2 }
0x1033   :  { %2959 = vmatpush3.msra.mxu1 %v3690_v53 }
0x1034   :  { %2960 = vmatprep.subr.mxu1 %v3136_v2 }
0x1035   :  { %2961 = vmatpush3.msra.mxu1 %v3286_v58 }
0x1036   :  { %2962 = vmatprep.subr.mxu1 %v3136_v2 }
0x1037   :  { %2963 = vmatpush3.msra.mxu1 %v3301_v61 }
0x1038   :  { %2978 = vmatprep.subr.mxu1 %v3136_v2 }
0x108b   :  { %v1922_v54 = vpop.f32.mrf.mxu0 }
0x108c   :  { %v1933_v1 = vadd.f32 %v1922_v54, %v3337_v12 }
0x108d   :  { %v2933_v4 = vpop.f32.mrf.mxu0 }
0x108e   :  { %1935 = vrot.lane.b32.xlu0 %v1933_v1, %s3139_s0 }
0x10e8   :  { %v1847_v5 = vpop.f32.mrf.mxu1 }
0x10e9   :  { %v1848_v13 = vadd.f32 %v1847_v5, %v3365_v18 }
0x10ea   :  { %v2922_v10 = vpop.f32.mrf.mxu1 }
0x10eb   :  { %v1926_v52 = vadd.f32 %v1922_v54, %v1848_v13 }
0x10ed   :  { %v2597_v0 = vmul.f32 -1.442695, %v1926_v52 }
0x10ef   :  { %3072 = vpow2.f32 %v2597_v0 }
0x10f0   :  { %v2019_v58 = vpop.f32.mrf.mxu1 }
0x10f1   :  { %v2030_v3 = vadd.f32 %v2019_v58, %v3243_v33  ;;  %v2023_v14 = vadd.f32 %v2019_v58, %v3708_v9 }
0x10f2   :  { %v2944_v6 = vpop.f32.mrf.mxu1 }
0x10f3   :  { %v2038_v61 = vrot.slane %v2030_v3, %v3227_v25  ;;  %v2599_v15 = vmul.f32 -1.442695, %v2023_v14  ;;  %v209_v3 = vcombine.high %v3708_v9, %v3708_v9 }
0x10f5   :  { %2039 = vrot.lane.b32.xlu1 %v2038_v61, %s3139_s0 }
0x10fc   :  { %v3073_v22 = vpop.eup %3072 }
0x10fd   :  { %v1930_v8 = vadd.f32 1.0, %v3073_v22 }
0x10ff   :  { %3074 = vrcp.f32 %v1930_v8 }
0x1100   :  { %v1936_v60 = vpop.permute.xlu0 %1935  ;;  %3076 = vpow2.f32 %v2599_v15 }
0x110c   :  { %v3075_v55 = vpop.eup %3074 }
0x110d   :  { %v1938_v11 = vmul.f32 %v3075_v55, %v1936_v60  ;;  %v3077_v16 = vpop.eup %3076  ;;  %v1945_v30 = vsub.f32 1.0, %v3075_v55  ;;  %v1951_v21 = vmul.f32 %v3075_v55, %v3626_v46  ;;  %v3108_v46 = vld [vmem:[%s3813_s1 + $0x38] sm:$0xff] }
0x110e   :  { %v2027_v17 = vadd.f32 1.0, %v3077_v16 }
0x110f   :  { %1940 = vrot.lane.b32.xlu0 %v1938_v11, %s3139_s0 }
0x1110   :  { %3078 = vrcp.f32 %v2027_v17 }
0x111d   :  { %v3079_v19 = vpop.eup %3078 }
0x111e   :  { %v2049_v36 = vsub.f32 1.0, %v3079_v19  ;;  %v2055_v38 = vmul.f32 %v3079_v19, %v3631_v49  ;;  %v3112_v49 = vld [vmem:[%s3813_s1 + $0x50] sm:$0xff] }
0x1167   :  { %v2040_v20 = vpop.permute.xlu1 %2039 }
0x1168   :  { %v2042_v23 = vmul.f32 %v3079_v19, %v2040_v20 }
0x116a   :  { %2044 = vrot.lane.b32.xlu1 %v2042_v23, %s3139_s0 }
0x1181   :  { %v1941_v24 = vpop.permute.xlu0 %1940 }
0x1182   :  { %v1943_v26 = vadd.f32 %v1941_v24, %v1848_v13 }
0x1184   :  { %3080 = vtanh.f32 %v1943_v26 }
0x1191   :  { %v3081_v27 = vpop.eup %3080 }
0x1192   :  { %1947 = vrot.lane.b32.xlu0 %v3081_v27, %s3140_s29 }
0x11dc   :  { %v2045_v41 = vpop.permute.xlu1 %2044 }
0x11dd   :  { %v2047_v28 = vadd.f32 %v2045_v41, %v3708_v9 }
0x11df   :  { %3082 = vtanh.f32 %v2047_v28 }
0x11ec   :  { %v3083_v29 = vpop.eup %3082 }
0x11ed   :  { %2051 = vrot.lane.b32.xlu1 %v3083_v29, %s3140_s29 }
0x1204   :  { %v1948_v31 = vpop.permute.xlu0 %1947 }
0x1205   :  { %v1950_v32 = vmul.f32 %v1948_v31, %v1945_v30 }
0x1207   :  { %v3716_v34 = vadd.f32 %v1951_v21, %v1950_v32 }
0x1209   :  { %2140 = vrot.lane.b32.xlu0 %v3716_v34, %s3140_s29 }
0x125f   :  { %v2052_v37 = vpop.permute.xlu1 %2051 }
0x1260   :  { %v2054_v7 = vmul.f32 %v2052_v37, %v2049_v36 }
0x1262   :  { %v3721_v39 = vadd.f32 %v2055_v38, %v2054_v7 }
0x1264   :  { %v2064_v40 = vrot.slane %v3721_v39, %v3227_v25 }
0x1266   :  { %2065 = vrot.lane.b32.xlu1 %v2064_v40, %s3140_s29 }
0x127b   :  { %v2141_v42 = vpop.permute.xlu0 %2140 }
0x127c   :  { %2546 = vst.msk [vmem:[%s3814_s2 + $0xa] sm:$0x3] %vm2540_vm3, %v2141_v42  ;;  %2965 = vmatmul.mubr.msk.f32.vlgmr.msra.gmra.mxu1 %vm218_vm2, %v2141_v42 }
0x127d   :  { %2979 = vmatpush3.msra.mxu1 %v3107_v45  ;;  %2986 = vmatprep.mubr.msk.f32.mxu1 %vm3137_vm0, %v3136_v2 }
0x127e   :  { %2980 = vmatprep.subr.mxu1 %v3136_v2 }
0x127f   :  { %2981 = vmatpush3.msra.mxu1 %v3108_v46 }
0x1280   :  { %2982 = vmatprep.subr.mxu1 %v3136_v2 }
0x1281   :  { %2983 = vmatpush3.msra.mxu1 %v3109_v47 }
0x1282   :  { %2984 = vmatprep.subr.mxu1 %v3136_v2 }
0x1283   :  { %2985 = vmatpush3.msra.mxu1 %v3110_v48 }
0x12d8   :  { %v2066_v43 = vpop.permute.xlu1 %2065 }
0x12d9   :  { %2954 = vmatmul.mubr.msk.f32.vlgmr.msra.gmra.mxu0 %vm218_vm2, %v2066_v43 }
0x12da   :  { %2968 = vmatpush3.msra.mxu0 %v3655_v56  ;;  %2975 = vmatprep.mubr.msk.f32.mxu0 %vm3137_vm0, %v3136_v2 }
0x12db   :  { %2969 = vmatprep.subr.mxu0 %v3136_v2 }
0x12dc   :  { %2970 = vmatpush3.msra.mxu0 %v3664_v57 }
0x12dd   :  { %2971 = vmatprep.subr.mxu0 %v3136_v2 }
0x12de   :  { %2972 = vmatpush3.msra.mxu0 %v3671_v59 }
0x12df   :  { %2973 = vmatprep.subr.mxu0 %v3136_v2 }
0x12e0   :  { %2974 = vmatpush3.msra.mxu0 %v3678_v63 }
0x12e1   :  { %2976 = vmatmul.mubr.msk.f32.vlgmr.msra.gmra.mxu0 %vm218_vm2, %v2066_v43  ;;  %2989 = vmatprep.subr.mxu0 %v3136_v2 }
0x12e2   :  { %2990 = vmatpush3.msra.mxu0 %v3111_v35  ;;  %2997 = vmatprep.mubr.msk.f32.mxu0 %vm3137_vm0, %v3136_v2 }
0x12e3   :  { %2991 = vmatprep.subr.mxu0 %v3136_v2 }
0x12e4   :  { %2992 = vmatpush3.msra.mxu0 %v3690_v53 }
0x12e5   :  { %2993 = vmatprep.subr.mxu0 %v3136_v2 }
0x12e6   :  { %2994 = vmatpush3.msra.mxu0 %v3112_v49 }
0x12e7   :  { %2995 = vmatprep.subr.mxu0 %v3136_v2 }
0x12e8   :  { %2996 = vmatpush3.msra.mxu0 %v3113_v50 }
0x133c   :  { %v2210_v51 = vpop.f32.mrf.mxu1 }
0x133d   :  { %v2221_v44 = vadd.f32 %v2210_v51, %v3337_v12 }
0x133e   :  { %v2966_v56 = vpop.f32.mrf.mxu1 }
0x133f   :  { %2223 = vrot.lane.b32.xlu0 %v2221_v44, %s3139_s0 }
0x1399   :  { %v2135_v57 = vpop.f32.mrf.mxu0 }
0x139a   :  { %v2136_v59 = vadd.f32 %v2135_v57, %v3365_v18 }
0x139b   :  { %v2955_v63 = vpop.f32.mrf.mxu0 }
0x139c   :  { %v2214_v53 = vadd.f32 %v2210_v51, %v2136_v59 }
0x139e   :  { %v2602_v54 = vmul.f32 -1.442695, %v2214_v53 }
0x13a0   :  { %3084 = vpow2.f32 %v2602_v54 }
0x13a1   :  { %v2307_v1 = vpop.f32.mrf.mxu0 }
0x13a2   :  { %v2318_v2 = vadd.f32 %v2307_v1, %v3243_v33  ;;  %v2311_v6 = vadd.f32 %v2307_v1, %v209_v3 }
0x13a3   :  { %v2977_v4 = vpop.f32.mrf.mxu0 }
0x13a4   :  { %v2326_v5 = vrot.slane %v2318_v2, %v3227_v25  ;;  %v2604_v61 = vmul.f32 -1.442695, %v2311_v6 }
0x13a6   :  { %2327 = vrot.lane.b32.xlu1 %v2326_v5, %s3139_s0 }
0x13ad   :  { %v3085_v13 = vpop.eup %3084 }
0x13ae   :  { %v2218_v10 = vadd.f32 1.0, %v3085_v13 }
0x13b0   :  { %3086 = vrcp.f32 %v2218_v10 }
0x13b1   :  { %v2224_v0 = vpop.permute.xlu0 %2223  ;;  %3088 = vpow2.f32 %v2604_v61 }
0x13bd   :  { %v3087_v52 = vpop.eup %3086 }
0x13be   :  { %v2226_v58 = vmul.f32 %v3087_v52, %v2224_v0  ;;  %v3089_v33 = vpop.eup %3088  ;;  %v2233_v17 = vsub.f32 1.0, %v3087_v52  ;;  %v2239_v20 = vmul.f32 %v3087_v52, %v3716_v34 }
0x13bf   :  { %v2315_v22 = vadd.f32 1.0, %v3089_v33 }
0x13c0   :  { %2228 = vrot.lane.b32.xlu0 %v2226_v58, %s3139_s0 }
0x13c1   :  { %3090 = vrcp.f32 %v2315_v22 }
0x13ce   :  { %v3091_v8 = vpop.eup %3090 }
0x13cf   :  { %v2337_v26 = vsub.f32 1.0, %v3091_v8  ;;  %v2343_v41 = vmul.f32 %v3091_v8, %v3721_v39 }
0x1418   :  { %v2328_v55 = vpop.permute.xlu1 %2327 }
0x1419   :  { %v2330_v60 = vmul.f32 %v3091_v8, %v2328_v55 }
0x141b   :  { %2332 = vrot.lane.b32.xlu1 %v2330_v60, %s3139_s0 }
0x1432   :  { %v2229_v11 = vpop.permute.xlu0 %2228 }
0x1433   :  { %v2231_v62 = vadd.f32 %v2229_v11, %v2136_v59 }
0x1435   :  { %3092 = vtanh.f32 %v2231_v62 }
0x1442   :  { %v3093_v14 = vpop.eup %3092 }
0x1443   :  { %2235 = vrot.lane.b32.xlu0 %v3093_v14, %s3140_s29 }
0x148d   :  { %v2333_v15 = vpop.permute.xlu1 %2332 }
0x148e   :  { %v2335_v16 = vadd.f32 %v2333_v15, %v209_v3 }
0x1490   :  { %3094 = vtanh.f32 %v2335_v16 }
0x149d   :  { %v3095_v9 = vpop.eup %3094 }
0x149e   :  { %2339 = vrot.lane.b32.xlu1 %v3095_v9, %s3140_s29 }
0x14b5   :  { %v2236_v19 = vpop.permute.xlu0 %2235 }
0x14b6   :  { %v2238_v23 = vmul.f32 %v2236_v19, %v2233_v17 }
0x14b8   :  { %v2240_v24 = vadd.f32 %v2239_v20, %v2238_v23 }
0x14ba   :  { %2428 = vrot.lane.b32.xlu0 %v2240_v24, %s3140_s29 }
0x1510   :  { %v2340_v27 = vpop.permute.xlu1 %2339 }
0x1511   :  { %v2342_v28 = vmul.f32 %v2340_v27, %v2337_v26 }
0x1513   :  { %v2344_v29 = vadd.f32 %v2343_v41, %v2342_v28 }
0x1515   :  { %v2352_v30 = vrot.slane %v2344_v29, %v3227_v25 }
0x1517   :  { %2353 = vrot.lane.b32.xlu1 %v2352_v30, %s3140_s29 }
0x152c   :  { %v2429_v31 = vpop.permute.xlu0 %2428 }
0x152d   :  { %2547 = vst.msk [vmem:[%s3814_s2 + $0xc] sm:$0x3] %vm2540_vm3, %v2429_v31  ;;  %2998 = vmatmul.mubr.msk.f32.vlgmr.msra.gmra.mxu0 %vm218_vm2, %v2429_v31 }
0x1589   :  { %v2354_v21 = vpop.permute.xlu1 %2353 }
0x158a   :  { %2987 = vmatmul.mubr.msk.f32.vlgmr.msra.gmra.mxu1 %vm218_vm2, %v2354_v21 }
0x15ed   :  { %v2498_v32 = vpop.f32.mrf.mxu0 }
0x15ee   :  { %v2509_v34 = vadd.f32 %v2498_v32, %v3337_v12 }
0x15ef   :  { %v2999_v36 = vpop.f32.mrf.mxu0 }
0x15f0   :  { %2511 = vrot.lane.b32.xlu0 %v2509_v34, %s3139_s0 }
0x164a   :  { %v2423_v25 = vpop.f32.mrf.mxu1 }
0x164b   :  { %v2424_v37 = vadd.f32 %v2423_v25, %v3365_v18 }
0x164c   :  { %v2988_v38 = vpop.f32.mrf.mxu1 }
0x164d   :  { %v2502_v7 = vadd.f32 %v2498_v32, %v2424_v37 }
0x164f   :  { %v2607_v39 = vmul.f32 -1.442695, %v2502_v7 }
0x1651   :  { %3096 = vpow2.f32 %v2607_v39 }
0x165e   :  { %v3097_v40 = vpop.eup %3096 }
0x165f   :  { %v2506_v42 = vadd.f32 1.0, %v3097_v40 }
0x1661   :  { %3098 = vrcp.f32 %v2506_v42 }
0x1662   :  { %v2512_v46 = vpop.permute.xlu0 %2511 }
0x166e   :  { %v3099_v45 = vpop.eup %3098 }
0x166f   :  { %v2514_v47 = vmul.f32 %v3099_v45, %v2512_v46  ;;  %v2521_v35 = vsub.f32 1.0, %v3099_v45  ;;  %v2527_v49 = vmul.f32 %v3099_v45, %v2240_v24 }
0x1671   :  { %2516 = vrot.lane.b32.xlu1 %v2514_v47, %s3139_s0 }
0x16e3   :  { %v2517_v48 = vpop.permute.xlu1 %2516 }
0x16e4   :  { %v2519_v12 = vadd.f32 %v2517_v48, %v2424_v37 }
0x16e6   :  { %3100 = vtanh.f32 %v2519_v12 }
0x16f3   :  { %v3101_v43 = vpop.eup %3100 }
0x16f4   :  { %2523 = vrot.lane.b32.xlu0 %v3101_v43, %s3140_s29 }
0x1766   :  { %v2524_v18 = vpop.permute.xlu0 %2523 }
0x1767   :  { %v2526_v50 = vmul.f32 %v2524_v18, %v2521_v35 }
0x1769   :  { %v2528_v51 = vadd.f32 %v2527_v49, %v2526_v50 }
0x176b   :  { %2530 = vrot.lane.b32.xlu1 %v2528_v51, %s3140_s29 }
0x17dd   :  { %v2531_v44 = vpop.permute.xlu1 %2530 }
0x17de   :  { %2548 = vst.msk [vmem:[%s3814_s2 + $0xe] sm:$0x3] %vm2540_vm3, %v2531_v44  ;;  %2549 = vst.msk [vmem:[#allocation2] sm:$0x3] %vm2540_vm3, %v2531_v44 }
0x17df   :  { %3125 = shalt.err (!%p3122_p4)
}
0x17e0   :  { %2561 = dma.vmem_to_hbm [thread:$0]  %s2559_s15, 32, %s3815_s3, [#allocation3]  }
0x17e1   :  { %3134 = dma.done.wait [#allocation3], 32  }
0x17e2   :  { %3135 = vsyncadd [#allocation3], 4294967264 }
0x17e3   :  { %2567 = vsyncpa [#allocation3], 1 }

</bundles_post_ra>
